<compile_context>
chip_gen: v5e
topology: v5e:2x2
jax: 0.10.0
libtpu: 0.0.40
codegen_flags: <defaults>
</compile_context>

<pallas_src>
import numpy as np

import jax
import jax.numpy as jnp
from jax import lax
from jax.experimental import pallas as pl
from jax.experimental.pallas import tpu as pltpu


# ----------------------------------------------------------------------------
# Fused LeNet kernel (one 28x28 image per grid step)
# ----------------------------------------------------------------------------
def _sigmoid(x):
    # exp -> EUP, approximate reciprocal -> EUP; keeps the VPU free.
    return pl.reciprocal(1.0 + jnp.exp(-x), approx=True)


def _dot(a, b):
    return jnp.dot(a, b, preferred_element_type=jnp.float32)


def _lenet_kernel(img_ref, m1_ref, b1_ref, m2_ref, b2_ref,
                  w1s_ref, bf1_ref, w2_ref, bf2_ref, w3_ref, bf3_ref,
                  r1_ref, c1_ref, r2_ref, c2_ref, out_ref):
    """Whole LeNet forward for one image, entirely in VMEM / vregs.

    Activation layout: rows = height, columns (lanes) = width*C + channel.
    """
    x = img_ref[0]                                                 # (28, 28)

    # --- conv1 (1->6, k=5, valid) + sigmoid: (24, 24*6 = 144) ----------------
    h1 = _dot(x[0:24, :], m1_ref[0])
    for ki in range(1, 5):
        h1 = h1 + _dot(x[ki:ki + 24, :], m1_ref[ki])
    h1 = _sigmoid(h1 + b1_ref[...])                                # (24, 144)

    # --- maxpool 2x2/2 via 0/1 selection matmuls: (12, 12*6 = 72) ------------
    hm = jnp.maximum(_dot(r1_ref[0], h1), _dot(r1_ref[1], h1))     # rows
    p1 = jnp.maximum(_dot(hm, c1_ref[0]), _dot(hm, c1_ref[1]))     # width

    # --- conv2 (6->16, k=5, valid) + sigmoid: (8, 8*16 = 128), lane dense ----
    h2 = _dot(p1[0:8, :], m2_ref[0])
    for ki in range(1, 5):
        h2 = h2 + _dot(p1[ki:ki + 8, :], m2_ref[ki])
    h2 = _sigmoid(h2 + b2_ref[...])                                # (8, 128)

    # --- maxpool 2x2/2: (4, 4*16 = 64) ---------------------------------------
    hm2 = jnp.maximum(_dot(r2_ref[0], h2), _dot(r2_ref[1], h2))
    p2 = jnp.maximum(_dot(hm2, c2_ref[0]), _dot(hm2, c2_ref[1]))

    # --- fc head; torch's NCHW flatten is pre-folded into w1s ----------------
    z = bf1_ref[...]                                               # (1, 120)
    for p in range(4):
        z = z + _dot(p2[p:p + 1, :], w1s_ref[p])
    z = _sigmoid(z)
    z = _sigmoid(_dot(z, w2_ref[...]) + bf2_ref[...])              # (1, 84)
    out = _dot(z, w3_ref[...]) + bf3_ref[...]                      # (1, 128)
    out_ref[0] = out                                               # 10 logits + 0-pad


# ----------------------------------------------------------------------------
# Wrapper: fold weights into matmul-friendly operands (done once per call)
# ----------------------------------------------------------------------------
def _conv_tap_matrices(w, in_w, out_w):
    """(OC, C, K, K) conv weight -> K width-Toeplitz matrices.

    m[ki, iw*C + c, ow*OC + oc] = w[oc, c, ki, iw - ow]  (0 <= iw-ow < K), so
    out[oh, ow*OC + oc] = sum_ki (x[oh+ki, :] @ m[ki]) reproduces nn.Conv2d's
    valid cross-correlation with column layout (width, channel)-interleaved.
    """
    oc, c, k, _ = w.shape
    place = np.zeros((k, in_w, out_w), np.float32)        # place[kj, ow+kj, ow] = 1
    for kj in range(k):
        place[kj, np.arange(out_w) + kj, np.arange(out_w)] = 1.0
    m = jnp.einsum("jwv,ocij->iwcvo", jnp.asarray(place), w)
    return m.reshape(k, in_w * c, out_w * oc)


def _row_pool_sel(h_in):
    """(2, h_in//2, h_in): [0] picks even rows, [1] odd rows (left-multiply)."""
    h_out = h_in // 2
    sel = np.zeros((2, h_out, h_in), np.float32)
    sel[0, np.arange(h_out), 2 * np.arange(h_out)] = 1.0
    sel[1, np.arange(h_out), 2 * np.arange(h_out) + 1] = 1.0
    return jnp.asarray(sel)


def _col_pool_sel(w_in, nch):
    """(2, w_in*nch, (w_in//2)*nch): even/odd width columns (right-multiply),
    preserving the (width, channel)-interleaved column layout."""
    w_out = w_in // 2
    even = np.zeros((w_in, w_out), np.float32)
    odd = np.zeros((w_in, w_out), np.float32)
    even[2 * np.arange(w_out), np.arange(w_out)] = 1.0
    odd[2 * np.arange(w_out) + 1, np.arange(w_out)] = 1.0
    eye = np.eye(nch, dtype=np.float32)
    return jnp.asarray(np.stack([np.kron(even, eye), np.kron(odd, eye)]))


def _pack_operands(params):
    m1 = _conv_tap_matrices(params["conv1_w"], in_w=28, out_w=24)    # (5, 28, 144)
    b1 = jnp.tile(params["conv1_b"], 24)[None, :]                    # (1, 144)
    m2 = _conv_tap_matrices(params["conv2_w"], in_w=12, out_w=8)     # (5, 72, 128)
    b2 = jnp.tile(params["conv2_b"], 8)[None, :]                     # (1, 128)
    # Fold torch NCHW flatten (idx = c*16 + y*4 + x) into 4 per-row weight
    # slabs consuming the kernel's pooled layout col = x*16 + c.
    w1s = (params["fc1_w"].reshape(16, 4, 4, 120)
           .transpose(1, 2, 0, 3).reshape(4, 64, 120))               # (4, 64, 120)
    bf1 = params["fc1_b"][None, :]                                   # (1, 120)
    w2 = params["fc2_w"]                                             # (120, 84)
    bf2 = params["fc2_b"][None, :]                                   # (1, 84)
    w3 = jnp.pad(params["fc3_w"], ((0, 0), (0, 128 - 10)))           # (84, 128)
    bf3 = jnp.pad(params["fc3_b"], (0, 128 - 10))[None, :]           # (1, 128)
    r1 = _row_pool_sel(24)                                           # (2, 12, 24)
    c1 = _col_pool_sel(24, 6)                                        # (2, 144, 72)
    r2 = _row_pool_sel(8)                                            # (2, 4, 8)
    c2 = _col_pool_sel(8, 16)                                        # (2, 128, 64)
    return (m1, b1, m2, b2, w1s, bf1, w2, bf2, w3, bf3, r1, c1, r2, c2)


def _full_spec(shape):
    zeros = (0,) * len(shape)
    return pl.BlockSpec(tuple(shape), lambda b, _z=zeros: _z)


def lenet_forward(params, img):
    """img: (B, 1, 28, 28) float32 -> logits (B, 10). One fused Pallas call."""
    B = img.shape[0]
    ops = _pack_operands(params)
    x = img[:, 0, :, :]                                              # (B, 28, 28)
    out = pl.pallas_call(
        _lenet_kernel,
        out_shape=jax.ShapeDtypeStruct((B, 1, 128), jnp.float32),
        grid=(B,),
        in_specs=[pl.BlockSpec((1, 28, 28), lambda b: (b, 0, 0))]
        + [_full_spec(o.shape) for o in ops],
        out_specs=pl.BlockSpec((1, 1, 128), lambda b: (b, 0, 0)),
        compiler_params=pltpu.CompilerParams(
            dimension_semantics=("parallel",)),
    )(x, *ops)
    return out.reshape(B, 128)[:, :10]


# ----------------------------------------------------------------------------
# Parameters, pure-XLA reference, and self-test
# ----------------------------------------------------------------------------
def init_lenet_params(key):
    """Deterministic synthetic LeNet parameters (float32, fc weights as (in, out))."""
    ks = jax.random.split(key, 10)
    s = 0.1
    return {
        "conv1_w": jax.random.normal(ks[0], (6, 1, 5, 5), jnp.float32) * s,
        "conv1_b": jax.random.normal(ks[1], (6,), jnp.float32) * s,
        "conv2_w": jax.random.normal(ks[2], (16, 6, 5, 5), jnp.float32) * s,
        "conv2_b": jax.random.normal(ks[3], (16,), jnp.float32) * s,
        "fc1_w": jax.random.normal(ks[4], (16 * 4 * 4, 120), jnp.float32) * s,
        "fc1_b": jax.random.normal(ks[5], (120,), jnp.float32) * s,
        "fc2_w": jax.random.normal(ks[6], (120, 84), jnp.float32) * s,
        "fc2_b": jax.random.normal(ks[7], (84,), jnp.float32) * s,
        "fc3_w": jax.random.normal(ks[8], (84, 10), jnp.float32) * s,
        "fc3_b": jax.random.normal(ks[9], (10,), jnp.float32) * s,
    }


def _lenet_reference(params, img):
    """Plain-XLA reference with the exact PyTorch LeNet semantics."""
    dn = ("NCHW", "OIHW", "NCHW")
    x = lax.conv_general_dilated(img, params["conv1_w"], (1, 1), "VALID",
                                 dimension_numbers=dn)
    x = jax.nn.sigmoid(x + params["conv1_b"].reshape(1, -1, 1, 1))
    x = lax.reduce_window(x, -jnp.inf, lax.max, (1, 1, 2, 2), (1, 1, 2, 2), "VALID")
    x = lax.conv_general_dilated(x, params["conv2_w"], (1, 1), "VALID",
                                 dimension_numbers=dn)
    x = jax.nn.sigmoid(x + params["conv2_b"].reshape(1, -1, 1, 1))
    x = lax.reduce_window(x, -jnp.inf, lax.max, (1, 1, 2, 2), (1, 1, 2, 2), "VALID")
    z = x.reshape(img.shape[0], -1)
    z = jax.nn.sigmoid(z @ params["fc1_w"] + params["fc1_b"])
    z = jax.nn.sigmoid(z @ params["fc2_w"] + params["fc2_b"])
    return z @ params["fc3_w"] + params["fc3_b"]


if __name__ == "__main__":
    key = jax.random.PRNGKey(0)
    pkey, xkey = jax.random.split(key)
    params = init_lenet_params(pkey)

    batch = 2  # LeNet's fc head requires 28x28 single-channel inputs (16*4*4 features)
    img = jax.random.normal(xkey, (batch, 1, 28, 28), jnp.float32)

    logits = jax.block_until_ready(jax.jit(lenet_forward)(params, img))
    assert logits.shape == (batch, 10), logits.shape
    assert logits.dtype == jnp.float32

    # Numerical check vs. plain-XLA reference (loose tolerance: the kernel's
    # sigmoid uses the EUP approximate reciprocal).
    ref = jax.block_until_ready(jax.jit(_lenet_reference)(params, img))
    np.testing.assert_allclose(np.asarray(logits), np.asarray(ref),
                               rtol=5e-2, atol=5e-2)
    print("KERNEL_OK")
</pallas_src>

<mosaic_0001>
module attributes {stable_mosaic.version = 11 : i64} {
  func.func @_lenet_kernel(%arg0: i32, %arg1: memref<1x28x28xf32, #tpu.memory_space<vmem>>, %arg2: memref<5x28x144xf32, #tpu.memory_space<vmem>>, %arg3: memref<1x144xf32, #tpu.memory_space<vmem>>, %arg4: memref<5x72x128xf32, #tpu.memory_space<vmem>>, %arg5: memref<1x128xf32, #tpu.memory_space<vmem>>, %arg6: memref<4x64x120xf32, #tpu.memory_space<vmem>>, %arg7: memref<1x120xf32, #tpu.memory_space<vmem>>, %arg8: memref<120x84xf32, #tpu.memory_space<vmem>>, %arg9: memref<1x84xf32, #tpu.memory_space<vmem>>, %arg10: memref<84x128xf32, #tpu.memory_space<vmem>>, %arg11: memref<1x128xf32, #tpu.memory_space<vmem>>, %arg12: memref<2x12x24xf32, #tpu.memory_space<vmem>>, %arg13: memref<2x144x72xf32, #tpu.memory_space<vmem>>, %arg14: memref<2x4x8xf32, #tpu.memory_space<vmem>>, %arg15: memref<2x128x64xf32, #tpu.memory_space<vmem>>, %arg16: memref<1x1x128xf32, #tpu.memory_space<vmem>>) attributes {dimension_semantics = [#tpu.dimension_semantics<parallel>], iteration_bounds = array<i64: 2>, scalar_prefetch = 0 : i64, scratch_operands = 0 : i64, tpu.core_type = #tpu.core_type<tc>, window_params = [{transform_indices = @transform_0, window_bounds = array<i64: 1, 28, 28>}, {pipeline_mode = #tpu.pipeline_mode<synchronous>, transform_indices = @transform_1, window_bounds = array<i64: 5, 28, 144>}, {pipeline_mode = #tpu.pipeline_mode<synchronous>, transform_indices = @transform_2, window_bounds = array<i64: 1, 144>}, {pipeline_mode = #tpu.pipeline_mode<synchronous>, transform_indices = @transform_3, window_bounds = array<i64: 5, 72, 128>}, {pipeline_mode = #tpu.pipeline_mode<synchronous>, transform_indices = @transform_4, window_bounds = array<i64: 1, 128>}, {pipeline_mode = #tpu.pipeline_mode<synchronous>, transform_indices = @transform_5, window_bounds = array<i64: 4, 64, 120>}, {pipeline_mode = #tpu.pipeline_mode<synchronous>, transform_indices = @transform_6, window_bounds = array<i64: 1, 120>}, {pipeline_mode = #tpu.pipeline_mode<synchronous>, transform_indices = @transform_7, window_bounds = array<i64: 120, 84>}, {pipeline_mode = #tpu.pipeline_mode<synchronous>, transform_indices = @transform_8, window_bounds = array<i64: 1, 84>}, {pipeline_mode = #tpu.pipeline_mode<synchronous>, transform_indices = @transform_9, window_bounds = array<i64: 84, 128>}, {pipeline_mode = #tpu.pipeline_mode<synchronous>, transform_indices = @transform_10, window_bounds = array<i64: 1, 128>}, {pipeline_mode = #tpu.pipeline_mode<synchronous>, transform_indices = @transform_11, window_bounds = array<i64: 2, 12, 24>}, {pipeline_mode = #tpu.pipeline_mode<synchronous>, transform_indices = @transform_12, window_bounds = array<i64: 2, 144, 72>}, {pipeline_mode = #tpu.pipeline_mode<synchronous>, transform_indices = @transform_13, window_bounds = array<i64: 2, 4, 8>}, {pipeline_mode = #tpu.pipeline_mode<synchronous>, transform_indices = @transform_14, window_bounds = array<i64: 2, 128, 64>}, {transform_indices = @transform_15, window_bounds = array<i64: 1, 1, 128>}]} {
    %c0 = arith.constant 0 : index
    %c0_0 = arith.constant 0 : index
    %c0_1 = arith.constant 0 : index
    %0 = vector.load %arg1[%c0, %c0_0, %c0_1] : memref<1x28x28xf32, #tpu.memory_space<vmem>>, vector<1x28x28xf32>
    %1 = vector.shape_cast %0 : vector<1x28x28xf32> to vector<28x28xf32>
    %2 = vector.extract_strided_slice %1 {offsets = [0, 0], sizes = [24, 28], strides = [1, 1]} : vector<28x28xf32> to vector<24x28xf32>
    %c0_2 = arith.constant 0 : index
    %c0_3 = arith.constant 0 : index
    %c0_4 = arith.constant 0 : index
    %3 = vector.load %arg2[%c0_2, %c0_3, %c0_4] : memref<5x28x144xf32, #tpu.memory_space<vmem>>, vector<1x28x144xf32>
    %4 = vector.shape_cast %3 : vector<1x28x144xf32> to vector<28x144xf32>
    %cst = arith.constant dense<0.000000e+00> : vector<24x144xf32>
    %5 = tpu.matmul %2, %4, %cst {dimension_numbers = #tpu.dot_dimension_numbers<[1], [0], [0], [1], [0, 0, 1, 1], [], []>} : vector<24x28xf32>, vector<28x144xf32>, vector<24x144xf32> -> vector<24x144xf32>
    %6 = vector.extract_strided_slice %1 {offsets = [1, 0], sizes = [24, 28], strides = [1, 1]} : vector<28x28xf32> to vector<24x28xf32>
    %c1 = arith.constant 1 : index
    %c0_5 = arith.constant 0 : index
    %c0_6 = arith.constant 0 : index
    %7 = vector.load %arg2[%c1, %c0_5, %c0_6] : memref<5x28x144xf32, #tpu.memory_space<vmem>>, vector<1x28x144xf32>
    %8 = vector.shape_cast %7 : vector<1x28x144xf32> to vector<28x144xf32>
    %cst_7 = arith.constant dense<0.000000e+00> : vector<24x144xf32>
    %9 = tpu.matmul %6, %8, %cst_7 {dimension_numbers = #tpu.dot_dimension_numbers<[1], [0], [0], [1], [0, 0, 1, 1], [], []>} : vector<24x28xf32>, vector<28x144xf32>, vector<24x144xf32> -> vector<24x144xf32>
    %10 = arith.addf %5, %9 : vector<24x144xf32>
    %11 = vector.extract_strided_slice %1 {offsets = [2, 0], sizes = [24, 28], strides = [1, 1]} : vector<28x28xf32> to vector<24x28xf32>
    %c2 = arith.constant 2 : index
    %c0_8 = arith.constant 0 : index
    %c0_9 = arith.constant 0 : index
    %12 = vector.load %arg2[%c2, %c0_8, %c0_9] : memref<5x28x144xf32, #tpu.memory_space<vmem>>, vector<1x28x144xf32>
    %13 = vector.shape_cast %12 : vector<1x28x144xf32> to vector<28x144xf32>
    %cst_10 = arith.constant dense<0.000000e+00> : vector<24x144xf32>
    %14 = tpu.matmul %11, %13, %cst_10 {dimension_numbers = #tpu.dot_dimension_numbers<[1], [0], [0], [1], [0, 0, 1, 1], [], []>} : vector<24x28xf32>, vector<28x144xf32>, vector<24x144xf32> -> vector<24x144xf32>
    %15 = arith.addf %10, %14 : vector<24x144xf32>
    %16 = vector.extract_strided_slice %1 {offsets = [3, 0], sizes = [24, 28], strides = [1, 1]} : vector<28x28xf32> to vector<24x28xf32>
    %c3 = arith.constant 3 : index
    %c0_11 = arith.constant 0 : index
    %c0_12 = arith.constant 0 : index
    %17 = vector.load %arg2[%c3, %c0_11, %c0_12] : memref<5x28x144xf32, #tpu.memory_space<vmem>>, vector<1x28x144xf32>
    %18 = vector.shape_cast %17 : vector<1x28x144xf32> to vector<28x144xf32>
    %cst_13 = arith.constant dense<0.000000e+00> : vector<24x144xf32>
    %19 = tpu.matmul %16, %18, %cst_13 {dimension_numbers = #tpu.dot_dimension_numbers<[1], [0], [0], [1], [0, 0, 1, 1], [], []>} : vector<24x28xf32>, vector<28x144xf32>, vector<24x144xf32> -> vector<24x144xf32>
    %20 = arith.addf %15, %19 : vector<24x144xf32>
    %21 = vector.extract_strided_slice %1 {offsets = [4, 0], sizes = [24, 28], strides = [1, 1]} : vector<28x28xf32> to vector<24x28xf32>
    %c4 = arith.constant 4 : index
    %c0_14 = arith.constant 0 : index
    %c0_15 = arith.constant 0 : index
    %22 = vector.load %arg2[%c4, %c0_14, %c0_15] : memref<5x28x144xf32, #tpu.memory_space<vmem>>, vector<1x28x144xf32>
    %23 = vector.shape_cast %22 : vector<1x28x144xf32> to vector<28x144xf32>
    %cst_16 = arith.constant dense<0.000000e+00> : vector<24x144xf32>
    %24 = tpu.matmul %21, %23, %cst_16 {dimension_numbers = #tpu.dot_dimension_numbers<[1], [0], [0], [1], [0, 0, 1, 1], [], []>} : vector<24x28xf32>, vector<28x144xf32>, vector<24x144xf32> -> vector<24x144xf32>
    %25 = arith.addf %20, %24 : vector<24x144xf32>
    %c0_17 = arith.constant 0 : index
    %c0_18 = arith.constant 0 : index
    %26 = vector.load %arg3[%c0_17, %c0_18] : memref<1x144xf32, #tpu.memory_space<vmem>>, vector<1x144xf32>
    %27 = vector.broadcast %26 : vector<1x144xf32> to vector<24x144xf32>
    %28 = arith.addf %25, %27 : vector<24x144xf32>
    %cst_19 = arith.constant 0.000000e+00 : f32
    %29 = vector.broadcast %cst_19 : f32 to vector<24x144xf32>
    %30 = arith.subf %29, %28 : vector<24x144xf32>
    %31 = math.exp %30 : vector<24x144xf32>
    %cst_20 = arith.constant 1.000000e+00 : f32
    %32 = vector.broadcast %cst_20 : f32 to vector<24x144xf32>
    %33 = arith.addf %32, %31 : vector<24x144xf32>
    %34 = tpu.reciprocal %33 {approx = true} : vector<24x144xf32> -> vector<24x144xf32>
    %c0_21 = arith.constant 0 : index
    %c0_22 = arith.constant 0 : index
    %c0_23 = arith.constant 0 : index
    %35 = vector.load %arg12[%c0_21, %c0_22, %c0_23] : memref<2x12x24xf32, #tpu.memory_space<vmem>>, vector<1x12x24xf32>
    %36 = vector.shape_cast %35 : vector<1x12x24xf32> to vector<12x24xf32>
    %cst_24 = arith.constant dense<0.000000e+00> : vector<12x144xf32>
    %37 = tpu.matmul %36, %34, %cst_24 {dimension_numbers = #tpu.dot_dimension_numbers<[1], [0], [0], [1], [0, 0, 1, 1], [], []>} : vector<12x24xf32>, vector<24x144xf32>, vector<12x144xf32> -> vector<12x144xf32>
    %c1_25 = arith.constant 1 : index
    %c0_26 = arith.constant 0 : index
    %c0_27 = arith.constant 0 : index
    %38 = vector.load %arg12[%c1_25, %c0_26, %c0_27] : memref<2x12x24xf32, #tpu.memory_space<vmem>>, vector<1x12x24xf32>
    %39 = vector.shape_cast %38 : vector<1x12x24xf32> to vector<12x24xf32>
    %cst_28 = arith.constant dense<0.000000e+00> : vector<12x144xf32>
    %40 = tpu.matmul %39, %34, %cst_28 {dimension_numbers = #tpu.dot_dimension_numbers<[1], [0], [0], [1], [0, 0, 1, 1], [], []>} : vector<12x24xf32>, vector<24x144xf32>, vector<12x144xf32> -> vector<12x144xf32>
    %41 = arith.maximumf %37, %40 : vector<12x144xf32>
    %c0_29 = arith.constant 0 : index
    %c0_30 = arith.constant 0 : index
    %c0_31 = arith.constant 0 : index
    %42 = vector.load %arg13[%c0_29, %c0_30, %c0_31] : memref<2x144x72xf32, #tpu.memory_space<vmem>>, vector<1x144x72xf32>
    %43 = vector.shape_cast %42 : vector<1x144x72xf32> to vector<144x72xf32>
    %cst_32 = arith.constant dense<0.000000e+00> : vector<12x72xf32>
    %44 = tpu.matmul %41, %43, %cst_32 {dimension_numbers = #tpu.dot_dimension_numbers<[1], [0], [0], [1], [0, 0, 1, 1], [], []>} : vector<12x144xf32>, vector<144x72xf32>, vector<12x72xf32> -> vector<12x72xf32>
    %c1_33 = arith.constant 1 : index
    %c0_34 = arith.constant 0 : index
    %c0_35 = arith.constant 0 : index
    %45 = vector.load %arg13[%c1_33, %c0_34, %c0_35] : memref<2x144x72xf32, #tpu.memory_space<vmem>>, vector<1x144x72xf32>
    %46 = vector.shape_cast %45 : vector<1x144x72xf32> to vector<144x72xf32>
    %cst_36 = arith.constant dense<0.000000e+00> : vector<12x72xf32>
    %47 = tpu.matmul %41, %46, %cst_36 {dimension_numbers = #tpu.dot_dimension_numbers<[1], [0], [0], [1], [0, 0, 1, 1], [], []>} : vector<12x144xf32>, vector<144x72xf32>, vector<12x72xf32> -> vector<12x72xf32>
    %48 = arith.maximumf %44, %47 : vector<12x72xf32>
    %49 = vector.extract_strided_slice %48 {offsets = [0, 0], sizes = [8, 72], strides = [1, 1]} : vector<12x72xf32> to vector<8x72xf32>
    %c0_37 = arith.constant 0 : index
    %c0_38 = arith.constant 0 : index
    %c0_39 = arith.constant 0 : index
    %50 = vector.load %arg4[%c0_37, %c0_38, %c0_39] : memref<5x72x128xf32, #tpu.memory_space<vmem>>, vector<1x72x128xf32>
    %51 = vector.shape_cast %50 : vector<1x72x128xf32> to vector<72x128xf32>
    %cst_40 = arith.constant dense<0.000000e+00> : vector<8x128xf32>
    %52 = tpu.matmul %49, %51, %cst_40 {dimension_numbers = #tpu.dot_dimension_numbers<[1], [0], [0], [1], [0, 0, 1, 1], [], []>} : vector<8x72xf32>, vector<72x128xf32>, vector<8x128xf32> -> vector<8x128xf32>
    %53 = vector.extract_strided_slice %48 {offsets = [1, 0], sizes = [8, 72], strides = [1, 1]} : vector<12x72xf32> to vector<8x72xf32>
    %c1_41 = arith.constant 1 : index
    %c0_42 = arith.constant 0 : index
    %c0_43 = arith.constant 0 : index
    %54 = vector.load %arg4[%c1_41, %c0_42, %c0_43] : memref<5x72x128xf32, #tpu.memory_space<vmem>>, vector<1x72x128xf32>
    %55 = vector.shape_cast %54 : vector<1x72x128xf32> to vector<72x128xf32>
    %cst_44 = arith.constant dense<0.000000e+00> : vector<8x128xf32>
    %56 = tpu.matmul %53, %55, %cst_44 {dimension_numbers = #tpu.dot_dimension_numbers<[1], [0], [0], [1], [0, 0, 1, 1], [], []>} : vector<8x72xf32>, vector<72x128xf32>, vector<8x128xf32> -> vector<8x128xf32>
    %57 = arith.addf %52, %56 : vector<8x128xf32>
    %58 = vector.extract_strided_slice %48 {offsets = [2, 0], sizes = [8, 72], strides = [1, 1]} : vector<12x72xf32> to vector<8x72xf32>
    %c2_45 = arith.constant 2 : index
    %c0_46 = arith.constant 0 : index
    %c0_47 = arith.constant 0 : index
    %59 = vector.load %arg4[%c2_45, %c0_46, %c0_47] : memref<5x72x128xf32, #tpu.memory_space<vmem>>, vector<1x72x128xf32>
    %60 = vector.shape_cast %59 : vector<1x72x128xf32> to vector<72x128xf32>
    %cst_48 = arith.constant dense<0.000000e+00> : vector<8x128xf32>
    %61 = tpu.matmul %58, %60, %cst_48 {dimension_numbers = #tpu.dot_dimension_numbers<[1], [0], [0], [1], [0, 0, 1, 1], [], []>} : vector<8x72xf32>, vector<72x128xf32>, vector<8x128xf32> -> vector<8x128xf32>
    %62 = arith.addf %57, %61 : vector<8x128xf32>
    %63 = vector.extract_strided_slice %48 {offsets = [3, 0], sizes = [8, 72], strides = [1, 1]} : vector<12x72xf32> to vector<8x72xf32>
    %c3_49 = arith.constant 3 : index
    %c0_50 = arith.constant 0 : index
    %c0_51 = arith.constant 0 : index
    %64 = vector.load %arg4[%c3_49, %c0_50, %c0_51] : memref<5x72x128xf32, #tpu.memory_space<vmem>>, vector<1x72x128xf32>
    %65 = vector.shape_cast %64 : vector<1x72x128xf32> to vector<72x128xf32>
    %cst_52 = arith.constant dense<0.000000e+00> : vector<8x128xf32>
    %66 = tpu.matmul %63, %65, %cst_52 {dimension_numbers = #tpu.dot_dimension_numbers<[1], [0], [0], [1], [0, 0, 1, 1], [], []>} : vector<8x72xf32>, vector<72x128xf32>, vector<8x128xf32> -> vector<8x128xf32>
    %67 = arith.addf %62, %66 : vector<8x128xf32>
    %68 = vector.extract_strided_slice %48 {offsets = [4, 0], sizes = [8, 72], strides = [1, 1]} : vector<12x72xf32> to vector<8x72xf32>
    %c4_53 = arith.constant 4 : index
    %c0_54 = arith.constant 0 : index
    %c0_55 = arith.constant 0 : index
    %69 = vector.load %arg4[%c4_53, %c0_54, %c0_55] : memref<5x72x128xf32, #tpu.memory_space<vmem>>, vector<1x72x128xf32>
    %70 = vector.shape_cast %69 : vector<1x72x128xf32> to vector<72x128xf32>
    %cst_56 = arith.constant dense<0.000000e+00> : vector<8x128xf32>
    %71 = tpu.matmul %68, %70, %cst_56 {dimension_numbers = #tpu.dot_dimension_numbers<[1], [0], [0], [1], [0, 0, 1, 1], [], []>} : vector<8x72xf32>, vector<72x128xf32>, vector<8x128xf32> -> vector<8x128xf32>
    %72 = arith.addf %67, %71 : vector<8x128xf32>
    %c0_57 = arith.constant 0 : index
    %c0_58 = arith.constant 0 : index
    %73 = vector.load %arg5[%c0_57, %c0_58] : memref<1x128xf32, #tpu.memory_space<vmem>>, vector<1x128xf32>
    %74 = vector.broadcast %73 : vector<1x128xf32> to vector<8x128xf32>
    %75 = arith.addf %72, %74 : vector<8x128xf32>
    %cst_59 = arith.constant 0.000000e+00 : f32
    %76 = vector.broadcast %cst_59 : f32 to vector<8x128xf32>
    %77 = arith.subf %76, %75 : vector<8x128xf32>
    %78 = math.exp %77 : vector<8x128xf32>
    %cst_60 = arith.constant 1.000000e+00 : f32
    %79 = vector.broadcast %cst_60 : f32 to vector<8x128xf32>
    %80 = arith.addf %79, %78 : vector<8x128xf32>
    %81 = tpu.reciprocal %80 {approx = true} : vector<8x128xf32> -> vector<8x128xf32>
    %c0_61 = arith.constant 0 : index
    %c0_62 = arith.constant 0 : index
    %c0_63 = arith.constant 0 : index
    %82 = vector.load %arg14[%c0_61, %c0_62, %c0_63] : memref<2x4x8xf32, #tpu.memory_space<vmem>>, vector<1x4x8xf32>
    %83 = vector.shape_cast %82 : vector<1x4x8xf32> to vector<4x8xf32>
    %cst_64 = arith.constant dense<0.000000e+00> : vector<4x128xf32>
    %84 = tpu.matmul %83, %81, %cst_64 {dimension_numbers = #tpu.dot_dimension_numbers<[1], [0], [0], [1], [0, 0, 1, 1], [], []>} : vector<4x8xf32>, vector<8x128xf32>, vector<4x128xf32> -> vector<4x128xf32>
    %c1_65 = arith.constant 1 : index
    %c0_66 = arith.constant 0 : index
    %c0_67 = arith.constant 0 : index
    %85 = vector.load %arg14[%c1_65, %c0_66, %c0_67] : memref<2x4x8xf32, #tpu.memory_space<vmem>>, vector<1x4x8xf32>
    %86 = vector.shape_cast %85 : vector<1x4x8xf32> to vector<4x8xf32>
    %cst_68 = arith.constant dense<0.000000e+00> : vector<4x128xf32>
    %87 = tpu.matmul %86, %81, %cst_68 {dimension_numbers = #tpu.dot_dimension_numbers<[1], [0], [0], [1], [0, 0, 1, 1], [], []>} : vector<4x8xf32>, vector<8x128xf32>, vector<4x128xf32> -> vector<4x128xf32>
    %88 = arith.maximumf %84, %87 : vector<4x128xf32>
    %c0_69 = arith.constant 0 : index
    %c0_70 = arith.constant 0 : index
    %c0_71 = arith.constant 0 : index
    %89 = vector.load %arg15[%c0_69, %c0_70, %c0_71] : memref<2x128x64xf32, #tpu.memory_space<vmem>>, vector<1x128x64xf32>
    %90 = vector.shape_cast %89 : vector<1x128x64xf32> to vector<128x64xf32>
    %cst_72 = arith.constant dense<0.000000e+00> : vector<4x64xf32>
    %91 = tpu.matmul %88, %90, %cst_72 {dimension_numbers = #tpu.dot_dimension_numbers<[1], [0], [0], [1], [0, 0, 1, 1], [], []>} : vector<4x128xf32>, vector<128x64xf32>, vector<4x64xf32> -> vector<4x64xf32>
    %c1_73 = arith.constant 1 : index
    %c0_74 = arith.constant 0 : index
    %c0_75 = arith.constant 0 : index
    %92 = vector.load %arg15[%c1_73, %c0_74, %c0_75] : memref<2x128x64xf32, #tpu.memory_space<vmem>>, vector<1x128x64xf32>
    %93 = vector.shape_cast %92 : vector<1x128x64xf32> to vector<128x64xf32>
    %cst_76 = arith.constant dense<0.000000e+00> : vector<4x64xf32>
    %94 = tpu.matmul %88, %93, %cst_76 {dimension_numbers = #tpu.dot_dimension_numbers<[1], [0], [0], [1], [0, 0, 1, 1], [], []>} : vector<4x128xf32>, vector<128x64xf32>, vector<4x64xf32> -> vector<4x64xf32>
    %95 = arith.maximumf %91, %94 : vector<4x64xf32>
    %c0_77 = arith.constant 0 : index
    %c0_78 = arith.constant 0 : index
    %96 = vector.load %arg7[%c0_77, %c0_78] : memref<1x120xf32, #tpu.memory_space<vmem>>, vector<1x120xf32>
    %97 = vector.extract_strided_slice %95 {offsets = [0, 0], sizes = [1, 64], strides = [1, 1]} : vector<4x64xf32> to vector<1x64xf32>
    %c0_79 = arith.constant 0 : index
    %c0_80 = arith.constant 0 : index
    %c0_81 = arith.constant 0 : index
    %98 = vector.load %arg6[%c0_79, %c0_80, %c0_81] : memref<4x64x120xf32, #tpu.memory_space<vmem>>, vector<1x64x120xf32>
    %99 = vector.shape_cast %98 : vector<1x64x120xf32> to vector<64x120xf32>
    %cst_82 = arith.constant dense<0.000000e+00> : vector<1x120xf32>
    %100 = tpu.matmul %97, %99, %cst_82 {dimension_numbers = #tpu.dot_dimension_numbers<[1], [0], [0], [1], [0, 0, 1, 1], [], []>} : vector<1x64xf32>, vector<64x120xf32>, vector<1x120xf32> -> vector<1x120xf32>
    %101 = arith.addf %96, %100 : vector<1x120xf32>
    %102 = vector.extract_strided_slice %95 {offsets = [1, 0], sizes = [1, 64], strides = [1, 1]} : vector<4x64xf32> to vector<1x64xf32>
    %c1_83 = arith.constant 1 : index
    %c0_84 = arith.constant 0 : index
    %c0_85 = arith.constant 0 : index
    %103 = vector.load %arg6[%c1_83, %c0_84, %c0_85] : memref<4x64x120xf32, #tpu.memory_space<vmem>>, vector<1x64x120xf32>
    %104 = vector.shape_cast %103 : vector<1x64x120xf32> to vector<64x120xf32>
    %cst_86 = arith.constant dense<0.000000e+00> : vector<1x120xf32>
    %105 = tpu.matmul %102, %104, %cst_86 {dimension_numbers = #tpu.dot_dimension_numbers<[1], [0], [0], [1], [0, 0, 1, 1], [], []>} : vector<1x64xf32>, vector<64x120xf32>, vector<1x120xf32> -> vector<1x120xf32>
    %106 = arith.addf %101, %105 : vector<1x120xf32>
    %107 = vector.extract_strided_slice %95 {offsets = [2, 0], sizes = [1, 64], strides = [1, 1]} : vector<4x64xf32> to vector<1x64xf32>
    %c2_87 = arith.constant 2 : index
    %c0_88 = arith.constant 0 : index
    %c0_89 = arith.constant 0 : index
    %108 = vector.load %arg6[%c2_87, %c0_88, %c0_89] : memref<4x64x120xf32, #tpu.memory_space<vmem>>, vector<1x64x120xf32>
    %109 = vector.shape_cast %108 : vector<1x64x120xf32> to vector<64x120xf32>
    %cst_90 = arith.constant dense<0.000000e+00> : vector<1x120xf32>
    %110 = tpu.matmul %107, %109, %cst_90 {dimension_numbers = #tpu.dot_dimension_numbers<[1], [0], [0], [1], [0, 0, 1, 1], [], []>} : vector<1x64xf32>, vector<64x120xf32>, vector<1x120xf32> -> vector<1x120xf32>
    %111 = arith.addf %106, %110 : vector<1x120xf32>
    %112 = vector.extract_strided_slice %95 {offsets = [3, 0], sizes = [1, 64], strides = [1, 1]} : vector<4x64xf32> to vector<1x64xf32>
    %c3_91 = arith.constant 3 : index
    %c0_92 = arith.constant 0 : index
    %c0_93 = arith.constant 0 : index
    %113 = vector.load %arg6[%c3_91, %c0_92, %c0_93] : memref<4x64x120xf32, #tpu.memory_space<vmem>>, vector<1x64x120xf32>
    %114 = vector.shape_cast %113 : vector<1x64x120xf32> to vector<64x120xf32>
    %cst_94 = arith.constant dense<0.000000e+00> : vector<1x120xf32>
    %115 = tpu.matmul %112, %114, %cst_94 {dimension_numbers = #tpu.dot_dimension_numbers<[1], [0], [0], [1], [0, 0, 1, 1], [], []>} : vector<1x64xf32>, vector<64x120xf32>, vector<1x120xf32> -> vector<1x120xf32>
    %116 = arith.addf %111, %115 : vector<1x120xf32>
    %cst_95 = arith.constant 0.000000e+00 : f32
    %117 = vector.broadcast %cst_95 : f32 to vector<1x120xf32>
    %118 = arith.subf %117, %116 : vector<1x120xf32>
    %119 = math.exp %118 : vector<1x120xf32>
    %cst_96 = arith.constant 1.000000e+00 : f32
    %120 = vector.broadcast %cst_96 : f32 to vector<1x120xf32>
    %121 = arith.addf %120, %119 : vector<1x120xf32>
    %122 = tpu.reciprocal %121 {approx = true} : vector<1x120xf32> -> vector<1x120xf32>
    %c0_97 = arith.constant 0 : index
    %c0_98 = arith.constant 0 : index
    %123 = vector.load %arg8[%c0_97, %c0_98] : memref<120x84xf32, #tpu.memory_space<vmem>>, vector<120x84xf32>
    %cst_99 = arith.constant dense<0.000000e+00> : vector<1x84xf32>
    %124 = tpu.matmul %122, %123, %cst_99 {dimension_numbers = #tpu.dot_dimension_numbers<[1], [0], [0], [1], [0, 0, 1, 1], [], []>} : vector<1x120xf32>, vector<120x84xf32>, vector<1x84xf32> -> vector<1x84xf32>
    %c0_100 = arith.constant 0 : index
    %c0_101 = arith.constant 0 : index
    %125 = vector.load %arg9[%c0_100, %c0_101] : memref<1x84xf32, #tpu.memory_space<vmem>>, vector<1x84xf32>
    %126 = arith.addf %124, %125 : vector<1x84xf32>
    %cst_102 = arith.constant 0.000000e+00 : f32
    %127 = vector.broadcast %cst_102 : f32 to vector<1x84xf32>
    %128 = arith.subf %127, %126 : vector<1x84xf32>
    %129 = math.exp %128 : vector<1x84xf32>
    %cst_103 = arith.constant 1.000000e+00 : f32
    %130 = vector.broadcast %cst_103 : f32 to vector<1x84xf32>
    %131 = arith.addf %130, %129 : vector<1x84xf32>
    %132 = tpu.reciprocal %131 {approx = true} : vector<1x84xf32> -> vector<1x84xf32>
    %c0_104 = arith.constant 0 : index
    %c0_105 = arith.constant 0 : index
    %133 = vector.load %arg10[%c0_104, %c0_105] : memref<84x128xf32, #tpu.memory_space<vmem>>, vector<84x128xf32>
    %cst_106 = arith.constant dense<0.000000e+00> : vector<1x128xf32>
    %134 = tpu.matmul %132, %133, %cst_106 {dimension_numbers = #tpu.dot_dimension_numbers<[1], [0], [0], [1], [0, 0, 1, 1], [], []>} : vector<1x84xf32>, vector<84x128xf32>, vector<1x128xf32> -> vector<1x128xf32>
    %c0_107 = arith.constant 0 : index
    %c0_108 = arith.constant 0 : index
    %135 = vector.load %arg11[%c0_107, %c0_108] : memref<1x128xf32, #tpu.memory_space<vmem>>, vector<1x128xf32>
    %136 = arith.addf %134, %135 : vector<1x128xf32>
    %c0_109 = arith.constant 0 : index
    %c0_110 = arith.constant 0 : index
    %c0_111 = arith.constant 0 : index
    %137 = vector.load %arg16[%c0_109, %c0_110, %c0_111] : memref<1x1x128xf32, #tpu.memory_space<vmem>>, vector<1x1x128xf32>
    %138 = vector.shape_cast %137 : vector<1x1x128xf32> to vector<1x128xf32>
    %139 = vector.shape_cast %136 : vector<1x128xf32> to vector<1x1x128xf32>
    tpu.vector_store %arg16[%c0_109, %c0_110, %c0_111], %139 {strides = array<i32>} : memref<1x1x128xf32, #tpu.memory_space<vmem>>, vector<1x1x128xf32>,
    return
  }
  func.func @transform_0(%arg0: i32) -> (i32, i32, i32) {
    %c0_i32 = arith.constant 0 : i32
    %c0_i32_0 = arith.constant 0 : i32
    %c0_i32_1 = arith.constant 0 : i32
    return %arg0, %c0_i32, %c0_i32_0 : i32, i32, i32
  }
  func.func @transform_1(%arg0: i32) -> (i32, i32, i32) {
    %c0_i32 = arith.constant 0 : i32
    %c0_i32_0 = arith.constant 0 : i32
    %c0_i32_1 = arith.constant 0 : i32
    %c0_i32_2 = arith.constant 0 : i32
    return %c0_i32, %c0_i32_0, %c0_i32_1 : i32, i32, i32
  }
  func.func @transform_2(%arg0: i32) -> (i32, i32) {
    %c0_i32 = arith.constant 0 : i32
    %c0_i32_0 = arith.constant 0 : i32
    %c0_i32_1 = arith.constant 0 : i32
    return %c0_i32, %c0_i32_0 : i32, i32
  }
  func.func @transform_3(%arg0: i32) -> (i32, i32, i32) {
    %c0_i32 = arith.constant 0 : i32
    %c0_i32_0 = arith.constant 0 : i32
    %c0_i32_1 = arith.constant 0 : i32
    %c0_i32_2 = arith.constant 0 : i32
    return %c0_i32, %c0_i32_0, %c0_i32_1 : i32, i32, i32
  }
  func.func @transform_4(%arg0: i32) -> (i32, i32) {
    %c0_i32 = arith.constant 0 : i32
    %c0_i32_0 = arith.constant 0 : i32
    %c0_i32_1 = arith.constant 0 : i32
    return %c0_i32, %c0_i32_0 : i32, i32
  }
  func.func @transform_5(%arg0: i32) -> (i32, i32, i32) {
    %c0_i32 = arith.constant 0 : i32
    %c0_i32_0 = arith.constant 0 : i32
    %c0_i32_1 = arith.constant 0 : i32
    %c0_i32_2 = arith.constant 0 : i32
    return %c0_i32, %c0_i32_0, %c0_i32_1 : i32, i32, i32
  }
  func.func @transform_6(%arg0: i32) -> (i32, i32) {
    %c0_i32 = arith.constant 0 : i32
    %c0_i32_0 = arith.constant 0 : i32
    %c0_i32_1 = arith.constant 0 : i32
    return %c0_i32, %c0_i32_0 : i32, i32
  }
  func.func @transform_7(%arg0: i32) -> (i32, i32) {
    %c0_i32 = arith.constant 0 : i32
    %c0_i32_0 = arith.constant 0 : i32
    %c0_i32_1 = arith.constant 0 : i32
    return %c0_i32, %c0_i32_0 : i32, i32
  }
  func.func @transform_8(%arg0: i32) -> (i32, i32) {
    %c0_i32 = arith.constant 0 : i32
    %c0_i32_0 = arith.constant 0 : i32
    %c0_i32_1 = arith.constant 0 : i32
    return %c0_i32, %c0_i32_0 : i32, i32
  }
  func.func @transform_9(%arg0: i32) -> (i32, i32) {
    %c0_i32 = arith.constant 0 : i32
    %c0_i32_0 = arith.constant 0 : i32
    %c0_i32_1 = arith.constant 0 : i32
    return %c0_i32, %c0_i32_0 : i32, i32
  }
  func.func @transform_10(%arg0: i32) -> (i32, i32) {
    %c0_i32 = arith.constant 0 : i32
    %c0_i32_0 = arith.constant 0 : i32
    %c0_i32_1 = arith.constant 0 : i32
    return %c0_i32, %c0_i32_0 : i32, i32
  }
  func.func @transform_11(%arg0: i32) -> (i32, i32, i32) {
    %c0_i32 = arith.constant 0 : i32
    %c0_i32_0 = arith.constant 0 : i32
    %c0_i32_1 = arith.constant 0 : i32
    %c0_i32_2 = arith.constant 0 : i32
    return %c0_i32, %c0_i32_0, %c0_i32_1 : i32, i32, i32
  }
  func.func @transform_12(%arg0: i32) -> (i32, i32, i32) {
    %c0_i32 = arith.constant 0 : i32
    %c0_i32_0 = arith.constant 0 : i32
    %c0_i32_1 = arith.constant 0 : i32
    %c0_i32_2 = arith.constant 0 : i32
    return %c0_i32, %c0_i32_0, %c0_i32_1 : i32, i32, i32
  }
  func.func @transform_13(%arg0: i32) -> (i32, i32, i32) {
    %c0_i32 = arith.constant 0 : i32
    %c0_i32_0 = arith.constant 0 : i32
    %c0_i32_1 = arith.constant 0 : i32
    %c0_i32_2 = arith.constant 0 : i32
    return %c0_i32, %c0_i32_0, %c0_i32_1 : i32, i32, i32
  }
  func.func @transform_14(%arg0: i32) -> (i32, i32, i32) {
    %c0_i32 = arith.constant 0 : i32
    %c0_i32_0 = arith.constant 0 : i32
    %c0_i32_1 = arith.constant 0 : i32
    %c0_i32_2 = arith.constant 0 : i32
    return %c0_i32, %c0_i32_0, %c0_i32_1 : i32, i32, i32
  }
  func.func @transform_15(%arg0: i32) -> (i32, i32, i32) {
    %c0_i32 = arith.constant 0 : i32
    %c0_i32_0 = arith.constant 0 : i32
    %c0_i32_1 = arith.constant 0 : i32
    return %arg0, %c0_i32, %c0_i32_0 : i32, i32, i32
  }
}

</mosaic_0001>

<bundles_post_ra>
// kernel: tile.13
= control target key start
LH: loop header
LB: loop body
LE: loop exit
PB: predicated region body
PF: predicated region fallthrough
CT: control target
= control target key end

     0   :  { %s34_s0 = inlined_call_operand.vmem [shape: f32[6], index: 0, kind: input, shape index: {}]   ;;  %s35_s1 = inlined_call_operand.vmem [shape: f32[24,6], index: 1, kind: output, shape index: {}]  }
   0x1   :  { %v4_v0 = vld [vmem:[%s34_s0] ss:$0 sm:$0xff] }
   0x2   :  { %5 = vst [vmem:[%s35_s1] sm:$0xff] %v4_v0 }
   0x3   :  { %10 = vst [vmem:[%s35_s1 + $0x8] sm:$0xff] %v4_v0 }
   0x4   :  { %11 = vst [vmem:[%s35_s1 + $0x10] sm:$0xff] %v4_v0 }

// kernel: tile.18
= control target key start
LH: loop header
LB: loop body
LE: loop exit
PB: predicated region body
PF: predicated region fallthrough
CT: control target
= control target key end

     0   :  { %s22_s0 = inlined_call_operand.vmem [shape: f32[16], index: 0, kind: input, shape index: {}]   ;;  %s23_s1 = inlined_call_operand.vmem [shape: f32[8,16], index: 1, kind: output, shape index: {}]  }
   0x1   :  { %v4_v0 = vld [vmem:[%s22_s0] ss:$0 sm:$0xff] }
   0x2   :  { %5 = vst [vmem:[%s23_s1] sm:$0xff] %v4_v0 }

// kernel: tile.14
= control target key start
LH: loop header
LB: loop body
LE: loop exit
PB: predicated region body
PF: predicated region fallthrough
CT: control target
= control target key end

     0   :  { %vm9_vm0 = vcmask 15360   ;;  %s212_s10 = smov 114   ;;  %s213_s13 = smov 126   ;;  %vm3_vm1 = vcmask 48128   ;;  %vm13_vm2 = vcmask 31744   ;;  %vm16_vm3 = vcmask 1048560   ;;  %s326_s0 = inlined_call_operand.vmem [shape: f32[24,6], index: 0, kind: input, shape index: {}]   ;;  %s327_s1 = inlined_call_operand.vmem [shape: f32[1,144], index: 1, kind: output, shape index: {}]  }
   0x1   :  { %v167_v0 = vld [vmem:[%s326_s0 + $0x13] sm:$0x1]   ;;  %v164_v1 = vld [vmem:[%s326_s0 + $0x15] sm:$0x1]   ;;  %v169_v4 = vld [vmem:[%s326_s0 + $0x11] sm:$0x1]  }
   0x2   :  { %26 = vrot.lane.b32.xlu1 %v167_v0, %s212_s10  ;;  %v165_v2 = vld [vmem:[%s326_s0 + $0x15] sm:$0x1]   ;;  %s214_s16 = smov 102   ;;  %v168_v5 = vld [vmem:[%s326_s0 + $0x12] sm:$0x1]   ;;  %s215_s21 = smov 108  }
   0x3   :  { %v10_v3 = vsel %vm9_vm0, %v165_v2, %v164_v1  ;;  %38 = vrot.lane.b32.xlu2 %v169_v4, %s214_s16  ;;  %v166_v6 = vld [vmem:[%s326_s0 + $0x14] sm:$0x1]   ;;  %v170_v7 = vld [vmem:[%s326_s0 + $0x10] sm:$0x1]   ;;  %s216_s24 = smov 120   ;;  %s217_s25 = smov 96  }
   0x4   :  { %11 = vrot.lane.b32.xlu0 %v10_v3, %s213_s13  ;;  %v172_v8 = vld [vmem:[%s326_s0 + $0xe] sm:$0x1]   ;;  %v171_v9 = vld [vmem:[%s326_s0 + $0xf] sm:$0x1]   ;;  %s218_s30 = smov 84   ;;  %s219_s4 = smov 90  }
   0x5   :  { %v173_v10 = vld [vmem:[%s326_s0 + $0xd] sm:$0x1]   ;;  %s220_s5 = smov 78   ;;  %v175_v11 = vld [vmem:[%s326_s0 + $0xb] sm:$0x1]   ;;  %s221_s10 = smov 66  }
   0x6   :  { %v174_v12 = vld [vmem:[%s326_s0 + $0xc] sm:$0x1]   ;;  %v176_v13 = vld [vmem:[%s326_s0 + $0xa] sm:$0x1]   ;;  %s222_s13 = smov 72   ;;  %s223_s14 = smov 60  }
   0x7   :  { %v178_v14 = vld [vmem:[%s326_s0 + $0x8] sm:$0x1]   ;;  %v177_v15 = vld [vmem:[%s326_s0 + $0x9] sm:$0x1]   ;;  %s224_s19 = smov 48   ;;  %s225_s22 = smov 54  }
   0x8   :  { %v179_v16 = vld [vmem:[%s326_s0 + $0x7] sm:$0x1]   ;;  %s226_s23 = smov 42   ;;  %v181_v17 = vld [vmem:[%s326_s0 + $0x5] sm:$0x1]   ;;  %s227_s28 = smov 30  }
   0x9   :  { %v180_v18 = vld [vmem:[%s326_s0 + $0x6] sm:$0x1]   ;;  %v182_v19 = vld [vmem:[%s326_s0 + $0x4] sm:$0x1]   ;;  %s228_s2 = smov 36   ;;  %s229_s3 = smov 24  }
   0xa   :  { %32 = vrot.lane.b32.xlu1 %v168_v5, %s215_s21  ;;  %v184_v20 = vld [vmem:[%s326_s0 + $0x2] sm:$0x1]   ;;  %v183_v21 = vld [vmem:[%s326_s0 + $0x3] sm:$0x1]   ;;  %s230_s8 = smov 12   ;;  %s231_s11 = smov 18  }
   0xb   :  { %44 = vrot.lane.b32.xlu2 %v170_v7, %s217_s25  ;;  %v185_v22 = vld [vmem:[%s326_s0 + $0x17] sm:$0x1]   ;;  %s232_s12 = smov 10   ;;  %v187_v23 = vld [vmem:[%s326_s0 + $0x16] sm:$0x1]   ;;  %s233_s17 = smov 4  }
   0xc   :  { %20 = vrot.lane.b32.xlu0 %v166_v6, %s216_s24  ;;  %v186_v24 = vld [vmem:[%s326_s0 + $0x1] sm:$0x1]   ;;  %s234_s18 = smov 6   ;;  %v2_v25 = vld [vmem:[%s326_s0] sm:$0x1]   ;;  %vm22_vm4 = vcmask 1032128  }
   0xd   :  { %4 = vst.msk [vmem:[#allocation0] sm:$0x1] %vm3_vm1, %v2_v25   ;;  %vm28_vm5 = vcmask 982928   ;;  %vm34_vm6 = vcmask 933728   ;;  %vm40_vm7 = vcmask 884528   ;;  %vm46_vm8 = vcmask 835328  }
   0xe   :  { %vm52_vm9 = vcmask 786128   ;;  %vm58_vm10 = vcmask 736928   ;;  %vm64_vm11 = vcmask 687728   ;;  %vm70_vm12 = vcmask 638528  }
   0xf   :  { %vm76_vm13 = vcmask 589328   ;;  %vm82_vm14 = vcmask 540128   ;;  %vm136_vm15 = vcmask 130128   ;;  %vm88_vm0 = vcmask 490928  }
  0x10   :  { %vm94_vm1 = vcmask 441728  }
  0x12   :  { %56 = vrot.lane.b32.xlu1 %v172_v8, %s218_s30 }
  0x13   :  { %62 = vrot.lane.b32.xlu2 %v173_v10, %s220_s5 }
  0x14   :  { %50 = vrot.lane.b32.xlu0 %v171_v9, %s219_s4 }
  0x1a   :  { %74 = vrot.lane.b32.xlu1 %v175_v11, %s221_s10 }
  0x1b   :  { %80 = vrot.lane.b32.xlu2 %v176_v13, %s223_s14 }
  0x1c   :  { %68 = vrot.lane.b32.xlu0 %v174_v12, %s222_s13 }
  0x22   :  { %92 = vrot.lane.b32.xlu1 %v178_v14, %s224_s19 }
  0x23   :  { %98 = vrot.lane.b32.xlu2 %v179_v16, %s226_s23 }
  0x24   :  { %86 = vrot.lane.b32.xlu0 %v177_v15, %s225_s22 }
  0x2a   :  { %110 = vrot.lane.b32.xlu1 %v181_v17, %s227_s28 }
  0x2b   :  { %116 = vrot.lane.b32.xlu2 %v182_v19, %s229_s3 }
  0x2c   :  { %104 = vrot.lane.b32.xlu0 %v180_v18, %s228_s2 }
  0x32   :  { %128 = vrot.lane.b32.xlu1 %v184_v20, %s230_s8 }
  0x33   :  { %134 = vrot.lane.b32.xlu2 %v185_v22, %s232_s12 }
  0x34   :  { %122 = vrot.lane.b32.xlu0 %v183_v21, %s231_s11 }
  0x3a   :  { %147 = vrot.lane.b32.xlu1 %v187_v23, %s233_s17 }
  0x3c   :  { %141 = vrot.lane.b32.xlu0 %v186_v24, %s234_s18 }
  0x5d   :  { %v39_v26 = vpop.permute.xlu2 %38  }
  0x65   :  { %v45_v27 = vpop.permute.xlu2 %44  }
  0x6d   :  { %v63_v28 = vpop.permute.xlu2 %62  }
  0x74   :  { %v27_v29 = vpop.permute.xlu1 %26  }
  0x75   :  { %v81_v31 = vpop.permute.xlu2 %80  }
  0x76   :  { %v12_v30 = vpop.permute.xlu0 %11  }
  0x77   :  { %15 = vst.msk [vmem:[#allocation0 + $0x8] sm:$0x1] %vm13_vm2, %v12_v30   ;;  %vm100_vm2 = vcmask 392528  }
  0x78   :  { %17 = vst.msk [vmem:[#allocation0] sm:$0x1] %vm16_vm3, %v12_v30   ;;  %vm106_vm3 = vcmask 343328  }
  0x7c   :  { %v33_v32 = vpop.permute.xlu1 %32  }
  0x7d   :  { %v99_v34 = vpop.permute.xlu2 %98  }
  0x7e   :  { %v21_v33 = vpop.permute.xlu0 %20  }
  0x7f   :  { %23 = vst.msk [vmem:[#allocation0] sm:$0x1] %vm22_vm4, %v21_v33   ;;  %vm112_vm4 = vcmask 294128  }
  0x80   :  { %29 = vst.msk [vmem:[#allocation0] sm:$0x1] %vm28_vm5, %v27_v29   ;;  %vm118_vm5 = vcmask 244928  }
  0x81   :  { %35 = vst.msk [vmem:[#allocation0] sm:$0x1] %vm34_vm6, %v33_v32   ;;  %vm124_vm6 = vcmask 195728  }
  0x82   :  { %41 = vst.msk [vmem:[#allocation0] sm:$0x1] %vm40_vm7, %v39_v26   ;;  %vm130_vm7 = vcmask 146528  }
  0x83   :  { %47 = vst.msk [vmem:[#allocation0] sm:$0x1] %vm46_vm8, %v45_v27   ;;  %vm149_vm8 = vcmask 80928  }
  0x84   :  { %v57_v35 = vpop.permute.xlu1 %56  }
  0x85   :  { %v117_v37 = vpop.permute.xlu2 %116  }
  0x86   :  { %v51_v36 = vpop.permute.xlu0 %50  }
  0x87   :  { %53 = vst.msk [vmem:[#allocation0] sm:$0x1] %vm52_vm9, %v51_v36   ;;  %vm143_vm9 = vcmask 97328  }
  0x88   :  { %59 = vst.msk [vmem:[#allocation0] sm:$0x1] %vm58_vm10, %v57_v35  }
  0x89   :  { %65 = vst.msk [vmem:[#allocation0] sm:$0x1] %vm64_vm11, %v63_v28  }
  0x8c   :  { %v75_v38 = vpop.permute.xlu1 %74  }
  0x8d   :  { %v135_v40 = vpop.permute.xlu2 %134  }
  0x8e   :  { %v69_v39 = vpop.permute.xlu0 %68   ;;  %138 = vst.msk [vmem:[#allocation0 + $0x8] sm:$0x1] %vm136_vm15, %v135_v40  }
  0x8f   :  { %71 = vst.msk [vmem:[#allocation0] sm:$0x1] %vm70_vm12, %v69_v39  }
  0x90   :  { %77 = vst.msk [vmem:[#allocation0] sm:$0x1] %vm76_vm13, %v75_v38  }
  0x91   :  { %83 = vst.msk [vmem:[#allocation0] sm:$0x1] %vm82_vm14, %v81_v31  }
  0x94   :  { %v93_v41 = vpop.permute.xlu1 %92  }
  0x96   :  { %v87_v42 = vpop.permute.xlu0 %86  }
  0x97   :  { %89 = vst.msk [vmem:[#allocation0] sm:$0x1] %vm88_vm0, %v87_v42  }
  0x98   :  { %95 = vst.msk [vmem:[#allocation0] sm:$0x1] %vm94_vm1, %v93_v41  }
  0x99   :  { %101 = vst.msk [vmem:[#allocation0] sm:$0x1] %vm100_vm2, %v99_v34  }
  0x9c   :  { %v111_v43 = vpop.permute.xlu1 %110  }
  0x9e   :  { %v105_v44 = vpop.permute.xlu0 %104  }
  0x9f   :  { %107 = vst.msk [vmem:[#allocation0] sm:$0x1] %vm106_vm3, %v105_v44  }
  0xa0   :  { %113 = vst.msk [vmem:[#allocation0] sm:$0x1] %vm112_vm4, %v111_v43  }
  0xa1   :  { %119 = vst.msk [vmem:[#allocation0] sm:$0x1] %vm118_vm5, %v117_v37  }
  0xa4   :  { %v129_v45 = vpop.permute.xlu1 %128  }
  0xa6   :  { %v123_v46 = vpop.permute.xlu0 %122  }
  0xa7   :  { %125 = vst.msk [vmem:[#allocation0] sm:$0x1] %vm124_vm6, %v123_v46  }
  0xa8   :  { %131 = vst.msk [vmem:[#allocation0] sm:$0x1] %vm130_vm7, %v129_v45  }
  0xac   :  { %v148_v47 = vpop.permute.xlu1 %147  }
  0xad   :  { %151 = vst.msk [vmem:[#allocation0 + $0x8] sm:$0x1] %vm149_vm8, %v148_v47  }
  0xae   :  { %v142_v48 = vpop.permute.xlu0 %141  }
  0xaf   :  { %144 = vst.msk [vmem:[#allocation0] sm:$0x1] %vm143_vm9, %v142_v48  }
  0xb4   :  { %v159_v49 = vld [vmem:[#allocation0 + $0x8] sm:$0x1] }
  0xb5   :  { %188 = vst [vmem:[%s327_s1 + $0x1] sm:$0x1] %v159_v49 }
  0xb6   :  { %v154_v50 = vld [vmem:[#allocation0] sm:$0x1] }
  0xb7   :  { %157 = vst [vmem:[%s327_s1] sm:$0x1] %v154_v50 }

// kernel: tile.19
= control target key start
LH: loop header
LB: loop body
LE: loop exit
PB: predicated region body
PF: predicated region fallthrough
CT: control target
= control target key end

     0   :  { %s67_s10 = smov 112   ;;  %s68_s11 = smov 80   ;;  %vm3_vm0 = vcmask 130048   ;;  %vm9_vm1 = vcmask 1048448   ;;  %vm15_vm2 = vcmask 917248   ;;  %vm21_vm3 = vcmask 786048   ;;  %s111_s0 = inlined_call_operand.vmem [shape: f32[8,16], index: 0, kind: input, shape index: {}]   ;;  %s112_s1 = inlined_call_operand.vmem [shape: f32[1,128], index: 1, kind: output, shape index: {}]  }
   0x1   :  { %v53_v0 = vld [vmem:[%s111_s0 + $0x7] sm:$0x1]   ;;  %v55_v1 = vld [vmem:[%s111_s0 + $0x5] sm:$0x1]   ;;  %v57_v2 = vld [vmem:[%s111_s0 + $0x3] sm:$0x1]  }
   0x2   :  { %7 = vrot.lane.b32.xlu0 %v53_v0, %s67_s10  ;;  %19 = vrot.lane.b32.xlu1 %v55_v1, %s68_s11  ;;  %s69_s14 = smov 48   ;;  %v54_v3 = vld [vmem:[%s111_s0 + $0x6] sm:$0x1]   ;;  %v56_v4 = vld [vmem:[%s111_s0 + $0x4] sm:$0x1]   ;;  %s70_s21 = smov 96  }
   0x3   :  { %31 = vrot.lane.b32.xlu2 %v57_v2, %s69_s14  ;;  %v58_v5 = vld [vmem:[%s111_s0 + $0x2] sm:$0x1]   ;;  %s71_s22 = smov 64   ;;  %s72_s23 = smov 32   ;;  %v59_v6 = vld [vmem:[%s111_s0 + $0x1] sm:$0x1]  }
   0x4   :  { %s73_s26 = smov 16   ;;  %v2_v7 = vld [vmem:[%s111_s0] sm:$0x1]   ;;  %vm27_vm4 = vcmask 654848   ;;  %vm33_vm5 = vcmask 523648   ;;  %vm39_vm6 = vcmask 392448  }
   0x5   :  { %4 = vst.msk [vmem:[#allocation0] sm:$0x1] %vm3_vm0, %v2_v7   ;;  %vm45_vm7 = vcmask 261248  }
   0xa   :  { %13 = vrot.lane.b32.xlu0 %v54_v3, %s70_s21  ;;  %25 = vrot.lane.b32.xlu1 %v56_v4, %s71_s22 }
   0xb   :  { %37 = vrot.lane.b32.xlu2 %v58_v5, %s72_s23 }
  0x12   :  { %43 = vrot.lane.b32.xlu0 %v59_v6, %s73_s26 }
  0x5d   :  { %v32_v8 = vpop.permute.xlu2 %31  }
  0x65   :  { %v38_v9 = vpop.permute.xlu2 %37  }
  0x74   :  { %v8_v10 = vpop.permute.xlu0 %7   ;;  %v20_v11 = vpop.permute.xlu1 %19  }
  0x75   :  { %10 = vst.msk [vmem:[#allocation0] sm:$0x1] %vm9_vm1, %v8_v10  }
  0x7c   :  { %v14_v12 = vpop.permute.xlu0 %13   ;;  %v26_v13 = vpop.permute.xlu1 %25  }
  0x7d   :  { %16 = vst.msk [vmem:[#allocation0] sm:$0x1] %vm15_vm2, %v14_v12  }
  0x7e   :  { %22 = vst.msk [vmem:[#allocation0] sm:$0x1] %vm21_vm3, %v20_v11  }
  0x7f   :  { %28 = vst.msk [vmem:[#allocation0] sm:$0x1] %vm27_vm4, %v26_v13  }
  0x80   :  { %34 = vst.msk [vmem:[#allocation0] sm:$0x1] %vm33_vm5, %v32_v8  }
  0x81   :  { %40 = vst.msk [vmem:[#allocation0] sm:$0x1] %vm39_vm6, %v38_v9  }
  0x84   :  { %v44_v14 = vpop.permute.xlu0 %43  }
  0x85   :  { %46 = vst.msk [vmem:[#allocation0] sm:$0x1] %vm45_vm7, %v44_v14  }
  0x8c   :  { %v49_v15 = vld [vmem:[#allocation0] sm:$0x1] }
  0x8d   :  { %52 = vst [vmem:[%s112_s1] sm:$0x1] %v49_v15 }

// kernel: lenet_forward.1
= control target key start
LH: loop header
LB: loop body
LE: loop exit
PB: predicated region body
PF: predicated region fallthrough
CT: control target
= control target key end

     0   :  { %s3107_s0 = inlined_call_operand.vmem [shape: f32[2,28,28], index: 0, kind: input, shape index: {}]   ;;  %s3108_s1 = inlined_call_operand.vmem [shape: f32[5,28,144], index: 1, kind: input, shape index: {}]   ;;  %s3109_s2 = inlined_call_operand.vmem [shape: f32[1,144], index: 2, kind: input, shape index: {}]   ;;  %s3110_s3 = inlined_call_operand.vmem [shape: f32[5,72,128], index: 3, kind: input, shape index: {}]   ;;  %s3111_s4 = inlined_call_operand.vmem [shape: f32[1,128], index: 4, kind: input, shape index: {}]   ;;  %s3112_s5 = inlined_call_operand.vmem [shape: f32[4,64,120], index: 5, kind: input, shape index: {}]   ;;  %s3113_s6 = inlined_call_operand.vmem [shape: f32[1,120], index: 6, kind: input, shape index: {}]   ;;  %s3114_s7 = inlined_call_operand.vmem [shape: f32[120,84], index: 7, kind: input, shape index: {}]   ;;  %s3115_s8 = inlined_call_operand.vmem [shape: f32[1,84], index: 8, kind: input, shape index: {}]   ;;  %s3116_s9 = inlined_call_operand.vmem [shape: f32[84,128], index: 9, kind: input, shape index: {}]   ;;  %s3117_s10 = inlined_call_operand.vmem [shape: f32[1,128], index: 10, kind: input, shape index: {}]   ;;  %s3118_s11 = inlined_call_operand.vmem [shape: f32[2,12,24], index: 11, kind: input, shape index: {}]   ;;  %s3119_s12 = inlined_call_operand.vmem [shape: f32[2,144,72], index: 12, kind: input, shape index: {}]   ;;  %s3120_s13 = inlined_call_operand.vmem [shape: f32[2,4,8], index: 13, kind: input, shape index: {}]   ;;  %s3121_s14 = inlined_call_operand.vmem [shape: f32[2,128,64], index: 14, kind: input, shape index: {}]   ;;  %s3122_s15 = inlined_call_operand.hbm [shape: f32[2,1,128], index: 15, kind: output, shape index: {}]  }
   0x1   :  { %3129 = sst [smem:[#allocation11_spill]] %s3107_s0 }
   0x2   :  { %20 = vsyncpa [#allocation3], 0 }
   0x3   :  { %22 = vsyncpa [#allocation3 + $0x1], 0  ;;  %s2243_s18 = smov 0   ;;  %s2245_s19 = smov 0  }
   0x4   :  { %s2247_s20 = smov 0   ;;  %s2249_s21 = smov 0  }
   0x5 LB: > { %3130 = sst [smem:[#allocation5_spill]] %s2149_s18  ;;  %s2264_s22 = sadd.s32 4294967295, %s2161_s21   ;;  %s2161_s21 = sphi %s2249_s21, %s3142_s21   ;;  %s2157_s20 = sphi %s2247_s20, %s3144_s20   ;;  %s2153_s19 = sphi %s2245_s19, %s3146_s19   ;;  %s2149_s18 = sphi %s2243_s18, %s3145_s18  }
   0x6   : > { %3131 = sst [smem:[#allocation6_spill]] %s2157_s20  ;;  %s1812_s23 = sadd.s32 4294967294, %s2161_s21  }
   0x7   : > { %3132 = sst [smem:[#allocation7_spill]] %s2161_s21  ;;  %s2268_s24 = sadd.s32 1, %s2161_s21  }
   0x8   : > { %3133 = sst [smem:[#allocation8_spill]] %s2268_s24  ;;  %s355_s25 = sadd.s32 1, %s2157_s20 }
   0x9   : > { %s352_s26 = ssub.s32 %s2161_s21, %s2268_s24  ;;  %p365_p0 = scmp.ne.s32.totalorder %s2157_s20, %s2153_s19 }
   0xa   : > { %p353_p1 = scmp.eq.s32.totalorder %s352_s26, 0  ;;  %p366_p2 = scmp.eq.s32.totalorder %s2264_s22, 1 }
   0xb   : > { %p371_p3 = scmp.ne.s32.totalorder %s2153_s19, %s2149_s18  ;;  %p372_p4 = scmp.eq.s32.totalorder %s1812_s23, 1 }
   0xc   : > { %s2279_s27 = scalar_select %p353_p1, %s2157_s20, %s355_s25  }
   0xd   : > { %p2281_p5 = por %p366_p2, %p365_p0  ;;  %p2285_p6 = por %p372_p4, %p371_p3 }
   0xe   : > { %3134 = sst [smem:[#allocation9_spill]] %s2279_s27  ;;  %p1815_p7 = scmp.ge.s32.totalorder %s2161_s21, 1 }
   0xf   : > { %s3136_s29 = scalar_select %p2285_p6, 1, 0 }
  0x10   : > { %p440_p8 = scmp.lt.s32.totalorder %s2161_s21, 3 }
  0x11   : > { %3137 = sst [smem:[#allocation10_spill]] %s3136_s29 }
  0x12   : > { %p441_p9 = pnand %p1815_p7, %p440_p8 }
  0x13   : > { %p487_p10 = scmp.lt.s32.totalorder (!%p441_p9), %s2264_s22, 1  ;;  %s3138_s0 = sld [smem:[#allocation11_spill]] (!%p441_p9) }
  0x14   : > { %444 = sbr.rel (%p441_p9) target bundleno = 1439 (0x59f), region = 80  ;;  %s1753_s30 = scalar_lea.hbm (!%p441_p9), %s3122_s15, %s2264_s22 }
  0x15   : > { %s1757_s24 = sshll.u32 (!%p441_p9), %s1753_s30, 4  ;;  %s2119_s27 = scalar_lea.hbm (!%p441_p9), %s3122_s15, 2  ;;  %s1758_s24 = int_to_ptr.hbm [resolvable:$true] %s1757_s24 }
  0x16   : > { %s2113_s26 = sshra.s32 (!%p441_p9), %s1758_s24, 4  ;;  %s2114_s26 = int_to_ptr.hbm [resolvable:$true] %s2113_s26 }
  0x17   : > { %s2115_s20 = scalar_lea.hbm (!%p441_p9), %s2114_s26, 1  ;;  %p2120_p0 = scmp.lt.s32.totalorder (!%p441_p9), %s2114_s26, %s3122_s15 }
  0x18   : > { %p2116_p11 = scmp.ne.s32.totalorder (!%p441_p9), %s2114_s26, %s2115_s20  ;;  %p2121_p1 = scmp.lt.s32.totalorder (!%p441_p9), %s2119_s27, %s2115_s20 }
  0x19   : > { %v502_v0 = vld [vmem:[%s3108_s1 + $0x30] sm:$0xf]  ;;  %vm532_vm0 = vcmask 1043456   ;;  %v500_v2 = vld [vmem:[%s3108_s1 + $0x20] sm:$0xff]  ;;  %s488_s25 = scalar_select %p487_p10, %s2264_s22, 1  ;;  %v501_v7 = vld [vmem:[%s3108_s1 + $0x28] sm:$0xff] }
  0x1a   : > { %v1824_v1 = vld [vmem:[%s3108_s1 + $0x70] sm:$0xf]  ;;  %1834 = vmatpush.msk.msra.mxu2 %vm532_vm0, %v502_v0  ;;  %v1822_v3 = vld [vmem:[%s3108_s1 + $0x60] sm:$0xff]  ;;  %v503_v6 = vld [vmem:[%s3108_s1 + $0x38] sm:$0xf]  ;;  %vm525_vm1 = vcmask 228352   ;;  %p2117_p12 = pnand %p2116_p11, %p2281_p5  ;;  %p2122_p2 = por %p2121_p1, %p2120_p0 }
  0x1b   : > { %1826 = vmatpush.msk.msra.mxu0 %vm532_vm0, %v1824_v1  ;;  %2016 = vmatpush.msk.msra.mxu1 %vm532_vm0, %v1824_v1  ;;  %v498_v4 = vld [vmem:[%s3108_s1 + $0x10] sm:$0xff]  ;;  %v496_v8 = vld [vmem:[%s3108_s1] sm:$0xff]  ;;  %s2015_s17 = sshll.u32 %s488_s25, 5  ;;  %v499_v11 = vld [vmem:[%s3108_s1 + $0x18] sm:$0xff]  ;;  %vm517_vm2 = vcmask 1046528   ;;  %vm664_vm3 = vcmask 1045504  }
  0x1c   : > { %v1820_v5 = vld [vmem:[%s3108_s1 + $0x50] sm:$0xff]  ;;  %616 = vmatpush.msra.mxu2 %v500_v2  ;;  %v1818_v9 = vld [vmem:[%s3108_s1 + $0x40] sm:$0xff]  ;;  %1838 = vmatpush.msk.msra.mxu3 %vm532_vm0, %v503_v6  ;;  %s491_s18 = scalar_lea.vmem %s3138_s0, %s2015_s17  ;;  %v1825_v12 = vld [vmem:[%s3108_s1 + $0x78] sm:$0xf]  ;;  %vm751_vm4 = vcmask 1044480   ;;  %vm959_vm5 = vcmask 195584   ;;  %p2118_p13 = pneg %p2117_p12 }
  0x1d   : > { %552 = vmatpush.msra.mxu0 %v1822_v3  ;;  %2017 = vmatpush.msra.mxu1 %v1822_v3  ;;  %v1848_v10 = vld [vmem:[%s3108_s1 + $0xb0] sm:$0xf]  ;;  %v2342_v14 = vld [vmem:[%s491_s18] sm:$0xff]  ;;  %v2344_v15 = vld [vmem:[%s491_s18 + $0x8] sm:$0xff]  ;;  %vm1089_vm6 = vcmask 130048   ;;  %vm1233_vm7 = vcmask 588800  }
  0x1e   : > { %617 = vmatpush.msra.mxu2 %v498_v4  ;;  %642 = vmatpush.msra.mxu3 %v501_v7  ;;  %v1864_v13 = vld [vmem:[%s3108_s1 + $0xf0] sm:$0xf]  ;;  %v518_v17 = vrot.slane %v2342_v14, 1  ;;  %v519_v18 = vrot.slane %v2344_v15, 1  ;;  %v1846_v20 = vld [vmem:[%s3108_s1 + $0xa0] sm:$0xff]  ;;  %v497_v22 = vld [vmem:[%s3108_s1 + $0x8] sm:$0xff]  ;;  %p2123_p3 = pnand %p2122_p2, %p2118_p13 }
  0x1f   : > { %553 = vmatpush.msra.mxu0 %v1820_v5  ;;  %2018 = vmatpush.msra.mxu1 %v1820_v5  ;;  %v2346_v16 = vld [vmem:[%s491_s18 + $0x10] sm:$0xff]  ;;  %v2357_v21 = vld [vmem:[%s491_s18 + $0x18] sm:$0xf]  ;;  %v1823_v25 = vld [vmem:[%s3108_s1 + $0x68] sm:$0xff]  ;;  %v665_v29 = vrot.slane %v2342_v14, 2  ;;  %v666_v30 = vrot.slane %v2344_v15, 2 }
  0x20   : > { %618 = vmatpush.msra.mxu2 %v496_v8  ;;  %v521_v19 = vrot.slane %v2346_v16, 1  ;;  %643 = vmatpush.msra.mxu3 %v499_v11  ;;  %v2363_v23 = vsel %vm517_vm2, %v518_v17, %v519_v18  ;;  %v1844_v26 = vld [vmem:[%s3108_s1 + $0x90] sm:$0xff]  ;;  %v1862_v27 = vld [vmem:[%s3108_s1 + $0xe0] sm:$0xff]  ;;  %v523_v28 = vrot.slane %v2357_v21, 1  ;;  %v1821_v31 = vld [vmem:[%s3108_s1 + $0x58] sm:$0xff]  ;;  %v668_v45 = vrot.slane %v2346_v16, 2 }
  0x21   : > { %554 = vmatpush.msra.mxu0 %v1818_v9  ;;  %1835 = vmatmul.msk.f32.vlgmr.msra.gmra.mxu2 %vm525_vm1, %v2342_v14  ;;  %v1865_v32 = vld [vmem:[%s3108_s1 + $0xf8] sm:$0xf]  ;;  %v1842_v33 = vld [vmem:[%s3108_s1 + $0x80] sm:$0xff]  ;;  %v1819_v34 = vld [vmem:[%s3108_s1 + $0x48] sm:$0xff]  ;;  %v2414_v39 = vsel %vm664_vm3, %v665_v29, %v666_v30  ;;  %v752_v51 = vrot.slane %v2342_v14, 3  ;;  %v753_v52 = vrot.slane %v2344_v15, 3 }
  0x22   : > { %2019 = vmatpush.msra.mxu1 %v1818_v9  ;;  %v2366_v24 = vsel %vm517_vm2, %v519_v18, %v521_v19  ;;  %1866 = vmatpush.msk.msrb.mxu2 %vm532_vm0, %v1864_v13  ;;  %v1860_v35 = vld [vmem:[%s3108_s1 + $0xd0] sm:$0xff]  ;;  %v1863_v37 = vld [vmem:[%s3108_s1 + $0xe8] sm:$0xff]  ;;  %v524_v38 = vsel %vm517_vm2, %v521_v19, %v523_v28  ;;  %v1858_v40 = vld [vmem:[%s3108_s1 + $0xc0] sm:$0xff]  ;;  %v669_v50 = vsel %vm664_vm3, %v666_v30, %v668_v45  ;;  %v670_v54 = vrot.slane %v2357_v21, 2  ;;  %s485_s18 = sand.u32 1, %s2153_s19  }
  0x23   : > { %1850 = vmatpush.msk.msrb.mxu0 %vm532_vm0, %v1848_v10  ;;  %1828 = vmatmul.msk.f32.vlgmr.msra.gmra.mxu1 %vm525_vm1, %v2366_v24  ;;  %v1880_v36 = vld [vmem:[%s3108_s1 + $0x130] sm:$0xf]  ;;  %v1878_v41 = vld [vmem:[%s3108_s1 + $0x120] sm:$0xff]  ;;  %v1849_v42 = vld [vmem:[%s3108_s1 + $0xb8] sm:$0xf]  ;;  %v754_v55 = vsel %vm751_vm4, %v752_v51, %v753_v52  ;;  %v755_v57 = vrot.slane %v2346_v16, 3 }
  0x24   : > { %1830 = vmatpush.msk.msrb.mxu1 %vm532_vm0, %v1825_v12  ;;  %1827 = vmatmul.msk.f32.vlgmr.msra.gmra.mxu0 %vm525_vm1, %v2363_v23  ;;  %v1876_v43 = vld [vmem:[%s3108_s1 + $0x110] sm:$0xff]  ;;  %v1861_v44 = vld [vmem:[%s3108_s1 + $0xd8] sm:$0xff]  ;;  %v1847_v46 = vld [vmem:[%s3108_s1 + $0xa8] sm:$0xff]  ;;  %v671_v56 = vsel %vm664_vm3, %v668_v45, %v670_v54  ;;  %v838_v60 = vrot.slane %v2342_v14, 4  ;;  %v839_v61 = vrot.slane %v2344_v15, 4  ;;  %v757_v2 = vrot.slane %v2357_v21, 3 }
  0x25   : > { %697 = vmatpush.msrb.mxu0 %v1846_v20  ;;  %644 = vmatpush.msra.mxu3 %v497_v22  ;;  %v1874_v47 = vld [vmem:[%s3108_s1 + $0x100] sm:$0xff]  ;;  %v1859_v48 = vld [vmem:[%s3108_s1 + $0xc8] sm:$0xff]  ;;  %v1845_v49 = vld [vmem:[%s3108_s1 + $0x98] sm:$0xff]  ;;  %v756_v62 = vsel %vm751_vm4, %v753_v52, %v755_v57  ;;  %v841_v3 = vrot.slane %v2346_v16, 4  ;;  %v843_v6 = vrot.slane %v2357_v21, 4  ;;  %vm1397_vm8 = vcmask 64512  }
  0x26   : > { %1839 = vmatmul.msk.f32.vlgmr.msra.gmra.mxu3 %vm525_vm1, %v2342_v14  ;;  %578 = vmatpush.msrb.mxu1 %v1823_v25  ;;  %v1843_v53 = vld [vmem:[%s3108_s1 + $0x88] sm:$0xff]  ;;  %v1881_v58 = vld [vmem:[%s3108_s1 + $0x138] sm:$0xf]  ;;  %v840_v1 = vsel %vm532_vm0, %v838_v60, %v839_v61  ;;  %v758_v4 = vsel %vm751_vm4, %v755_v57, %v757_v2  ;;  %v915_v29 = vld [vmem:[%s3109_s2] sm:$0x3]  ;;  %vm1530_vm9 = vcmask 523264  }
  0x27   : > { %698 = vmatpush.msrb.mxu0 %v1844_v26  ;;  %784 = vmatpush.msrb.mxu2 %v1862_v27  ;;  %v1879_v59 = vld [vmem:[%s3108_s1 + $0x128] sm:$0xff]  ;;  %v1877_v63 = vld [vmem:[%s3108_s1 + $0x118] sm:$0xff]  ;;  %v842_v5 = vsel %vm532_vm0, %v839_v61, %v841_v3  ;;  %v844_v7 = vsel %vm532_vm0, %v841_v3, %v843_v6  ;;  %vm1675_vm10 = vcmask 982016   ;;  %vm1716_vm11 = vcmask 687104   ;;  %s486_s21 = scalar_lea.vmem [#allocation2], %s485_s18  ;;  %s1745_s23 = scalar_lea.sflag [#allocation3], %s485_s18 }
  0x28   : > { %579 = vmatpush.msrb.mxu1 %v1821_v31  ;;  %1870 = vmatpush.msk.msrb.mxu3 %vm532_vm0, %v1865_v32  ;;  %v1875_v0 = vld [vmem:[%s3108_s1 + $0x108] sm:$0xff]  ;;  %s1755_s17 = sshll.u32 %s486_s21, 4  ;;  %s1756_s17 = int_to_ptr.vmem [resolvable:$true] %s1755_s17 }
  0x29   : > { %1836 = vmatmul.msk.f32.gmra.mxu2 %vm525_vm1, %v2344_v15  ;;  %699 = vmatpush.msrb.mxu0 %v1842_v33  ;;  %v917_v33 = vperm.slane %v915_v29, 0 }
  0x2a   : > { %580 = vmatpush.msrb.mxu1 %v1819_v34  ;;  %785 = vmatpush.msrb.mxu2 %v1860_v35 }
  0x2b   : > { %1882 = vmatpush.msk.msra.mxu0 %vm532_vm0, %v1880_v36  ;;  %810 = vmatpush.msrb.mxu3 %v1863_v37 }
  0x2c   : > { %1829 = vmatmul.msk.f32.gmra.mxu1 %vm525_vm1, %v524_v38  ;;  %1851 = vmatmul.msk.f32.vlgmr.msrb.gmra.mxu0 %vm525_vm1, %v2414_v39 }
  0x2d   : > { %786 = vmatpush.msrb.mxu2 %v1858_v40  ;;  %870 = vmatpush.msra.mxu0 %v1878_v41 }
  0x2e   : > { %1840 = vmatmul.msk.f32.gmra.mxu3 %vm525_vm1, %v2344_v15  ;;  %1854 = vmatpush.msk.msra.mxu1 %vm532_vm0, %v1849_v42 }
  0x2f   : > { %871 = vmatpush.msra.mxu0 %v1876_v43  ;;  %811 = vmatpush.msrb.mxu3 %v1861_v44 }
  0x30   : > { %723 = vmatpush.msra.mxu1 %v1847_v46 }
  0x31   : > { %1837 = vmatmul.msk.f32.gmra.mxu2 %vm525_vm1, %v2346_v16  ;;  %872 = vmatpush.msra.mxu0 %v1874_v47 }
  0x32   : > { %812 = vmatpush.msrb.mxu3 %v1859_v48  ;;  %724 = vmatpush.msra.mxu1 %v1845_v49 }
  0x34   : > { %1831 = vmatmul.msk.f32.vlgmr.msrb.gmra.mxu1 %vm525_vm1, %v2363_v23  ;;  %1852 = vmatmul.msk.f32.gmra.mxu0 %vm525_vm1, %v669_v50 }
  0x35   : > { %725 = vmatpush.msra.mxu1 %v1843_v53 }
  0x36   : > { %1841 = vmatmul.msk.f32.gmra.mxu3 %vm525_vm1, %v2346_v16 }
  0x37   : > { %1886 = vmatpush.msk.msrb.mxu1 %vm532_vm0, %v1881_v58 }
  0x39   : > { %1867 = vmatmul.msk.f32.vlgmr.msrb.gmra.mxu2 %vm525_vm1, %v754_v55  ;;  %896 = vmatpush.msrb.mxu1 %v1879_v59 }
  0x3b   : > { %897 = vmatpush.msrb.mxu1 %v1877_v63 }
  0x3c   : > { %1832 = vmatmul.msk.f32.gmra.mxu1 %vm525_vm1, %v2366_v24  ;;  %1853 = vmatmul.msk.f32.gmra.mxu0 %vm525_vm1, %v671_v56 }
  0x3d   : > { %898 = vmatpush.msrb.mxu1 %v1875_v0 }
  0x3e   : > { %1871 = vmatmul.msk.f32.vlgmr.msrb.gmra.mxu3 %vm525_vm1, %v754_v55 }
  0x41   : > { %1868 = vmatmul.msk.f32.gmra.mxu2 %vm525_vm1, %v756_v62 }
  0x44   : > { %1833 = vmatmul.msk.f32.gmra.mxu1 %vm525_vm1, %v524_v38  ;;  %1883 = vmatmul.msk.f32.vlgmr.msra.gmra.mxu0 %vm525_vm1, %v840_v1 }
  0x46   : > { %1872 = vmatmul.msk.f32.gmra.mxu3 %vm525_vm1, %v756_v62 }
  0x49   : > { %1869 = vmatmul.msk.f32.gmra.mxu2 %vm525_vm1, %v758_v4 }
  0x4c   : > { %1855 = vmatmul.msk.f32.vlgmr.msra.gmra.mxu1 %vm525_vm1, %v2414_v39  ;;  %1884 = vmatmul.msk.f32.gmra.mxu0 %vm525_vm1, %v842_v5 }
  0x4e   : > { %1873 = vmatmul.msk.f32.gmra.mxu3 %vm525_vm1, %v758_v4 }
  0x54   : > { %1856 = vmatmul.msk.f32.gmra.mxu1 %vm525_vm1, %v669_v50  ;;  %1885 = vmatmul.msk.f32.gmra.mxu0 %vm525_vm1, %v844_v7 }
  0x5c   : > { %1857 = vmatmul.msk.f32.gmra.mxu1 %vm525_vm1, %v671_v56 }
  0x64   : > { %1887 = vmatmul.msk.f32.vlgmr.msrb.gmra.mxu1 %vm525_vm1, %v840_v1 }
  0x6c   : > { %1888 = vmatmul.msk.f32.gmra.mxu1 %vm525_vm1, %v842_v5 }
  0x74   : > { %1889 = vmatmul.msk.f32.gmra.mxu1 %vm525_vm1, %v844_v7 }
  0xa0   : > { %v559_v9 = vpop.f32.mrf.mxu1 }
  0xa1   : > { %v556_v8 = vpop.f32.mrf.mxu0 }
  0xa4   : > { %v620_v10 = vpop.f32.mrf.mxu2 }
  0xa5   : > { %v621_v21 = vadd.f32 %v620_v10, %v556_v8  ;;  %v918_v8 = vperm.slane %v915_v29, 1 }
  0xa9   : > { %v562_v11 = vpop.f32.mrf.mxu1  ;;  %v701_v12 = vpop.f32.mrf.mxu0 }
  0xaa   : > { %v646_v19 = vpop.f32.mrf.mxu3  ;;  %v736_v26 = vadd.f32 %v701_v12, %v621_v21 }
  0xac   : > { %v623_v13 = vpop.f32.mrf.mxu2 }
  0xad   : > { %v624_v24 = vadd.f32 %v623_v13, %v559_v9 }
  0xb1   : > { %v582_v14 = vpop.f32.mrf.mxu1  ;;  %v704_v15 = vpop.f32.mrf.mxu0 }
  0xb2   : > { %v738_v27 = vadd.f32 %v704_v15, %v624_v24  ;;  %v649_v28 = vpop.f32.mrf.mxu3  ;;  %v647_v59 = vadd.f32 %v646_v19, %v582_v14  ;;  %v957_v15 = vld [vmem:[%s3118_s11] sm:$0xff] }
  0xb4   : > { %v626_v16 = vpop.f32.mrf.mxu2 }
  0xb5   : > { %v627_v37 = vadd.f32 %v626_v16, %v562_v11 }
  0xb9   : > { %v585_v17 = vpop.f32.mrf.mxu1  ;;  %v707_v18 = vpop.f32.mrf.mxu0 }
  0xba   : > { %v740_v41 = vadd.f32 %v707_v18, %v627_v37  ;;  %v652_v42 = vpop.f32.mrf.mxu3  ;;  %v650_v63 = vadd.f32 %v649_v28, %v585_v17 }
  0xbc   : > { %v788_v20 = vpop.f32.mrf.mxu2 }
  0xbd   : > { %v823_v30 = vadd.f32 %v788_v20, %v736_v26  ;;  %v958_v26 = vld [vmem:[%s3118_s11 + $0x8] sm:$0xf] }
  0xc1   : > { %v588_v22 = vpop.f32.mrf.mxu1  ;;  %v874_v23 = vpop.f32.mrf.mxu0 }
  0xc2   : > { %v909_v32 = vadd.f32 %v874_v23, %v823_v30  ;;  %v814_v54 = vpop.f32.mrf.mxu3  ;;  %v653_v10 = vadd.f32 %v652_v42, %v588_v22  ;;  %v1894_v42 = vld [vmem:[%s3118_s11 + $0x10] sm:$0xff] }
  0xc4   : > { %v791_v25 = vpop.f32.mrf.mxu2  ;;  %v921_v39 = vadd.f32 %v917_v33, %v909_v32  ;;  %v1086_v32 = vld [vmem:[%s3119_s12 + $0x78] sm:$0xff] }
  0xc5   : > { %v825_v31 = vadd.f32 %v791_v25, %v738_v27  ;;  %1096 = vmatpush.msrb.mxu0 %v1086_v32  ;;  %v1927_v32 = vld [vmem:[%s3110_s3 + $0x70] sm:$0xff] }
  0xc6   : > { %v927_v45 = vsub.f32 0.0, %v921_v39 }
  0xc8   : > { %v933_v51 = vmul.f32 1.442695, %v927_v45  ;;  %v1084_v45 = vld [vmem:[%s3119_s12 + $0x68] sm:$0xff] }
  0xc9   : > { %v727_v34 = vpop.f32.mrf.mxu1  ;;  %v877_v35 = vpop.f32.mrf.mxu0 }
  0xca   : > { %v911_v36 = vadd.f32 %v877_v35, %v825_v31  ;;  %v737_v1 = vadd.f32 %v727_v34, %v647_v59  ;;  %v817_v2 = vpop.f32.mrf.mxu3  ;;  %v1077_v59 = vld [vmem:[%s3119_s12 + $0x30] sm:$0xff] }
  0xcc   : > { %v923_v38 = vadd.f32 %v917_v33, %v911_v36  ;;  %v794_v40 = vpop.f32.mrf.mxu2  ;;  %v824_v4 = vadd.f32 %v814_v54, %v737_v1  ;;  %v1911_v54 = vld [vmem:[%s3119_s12 + $0xd8] sm:$0xff] }
  0xcd   : > { %v827_v44 = vadd.f32 %v794_v40, %v740_v41  ;;  %v1917_v41 = vld [vmem:[%s3119_s12 + $0x108] sm:$0xff]  ;;  %v1074_v1 = vld [vmem:[%s3119_s12 + $0x18] sm:$0xff] }
  0xce   : > { %v929_v43 = vsub.f32 0.0, %v923_v38 }
  0xd0   : > { %v937_v49 = vmul.f32 1.442695, %v929_v43  ;;  %v1916_v43 = vld [vmem:[%s3119_s12 + $0x100] sm:$0xff] }
  0xd1   : > { %v730_v46 = vpop.f32.mrf.mxu1  ;;  %v880_v47 = vpop.f32.mrf.mxu0 }
  0xd2   : > { %v913_v48 = vadd.f32 %v880_v47, %v827_v44  ;;  %2063 = vpow2.f32 %v937_v49  ;;  %v739_v3 = vadd.f32 %v730_v46, %v650_v63  ;;  %v820_v17 = vpop.f32.mrf.mxu3  ;;  %v1895_v44 = vld [vmem:[%s3118_s11 + $0x18] sm:$0xf]  ;;  %v1083_v47 = vld [vmem:[%s3119_s12 + $0x60] sm:$0xff] }
  0xd3   : > { %2065 = vpow2.f32 %v933_v51  ;;  %v1915_v46 = vld [vmem:[%s3119_s12 + $0xf8] sm:$0xff]  ;;  %v1081_v51 = vld [vmem:[%s3119_s12 + $0x50] sm:$0xff]  ;;  %v1075_v63 = vld [vmem:[%s3119_s12 + $0x20] sm:$0xff] }
  0xd4   : > { %v925_v50 = vadd.f32 %v917_v33, %v913_v48  ;;  %v826_v5 = vadd.f32 %v817_v2, %v739_v3  ;;  %v1085_v33 = vld [vmem:[%s3119_s12 + $0x70] sm:$0xff]  ;;  %v1082_v49 = vld [vmem:[%s3119_s12 + $0x58] sm:$0xff]  ;;  %v1905_v2 = vld [vmem:[%s3119_s12 + $0xa8] sm:$0xff] }
  0xd5   : > { %1097 = vmatpush.msrb.mxu0 %v1085_v33  ;;  %v1914_v48 = vld [vmem:[%s3119_s12 + $0xf0] sm:$0xff]  ;;  %v1213_v33 = vld [vmem:[%s3110_s3 + $0x20] sm:$0xff] }
  0xd6   : > { %v931_v52 = vsub.f32 0.0, %v925_v50  ;;  %v1913_v50 = vld [vmem:[%s3119_s12 + $0xe8] sm:$0xff]  ;;  %v1073_v3 = vld [vmem:[%s3119_s12 + $0x10] sm:$0xff] }
  0xd7   : > { %1098 = vmatpush.msrb.mxu0 %v1084_v45  ;;  %v1959_v45 = vld [vmem:[%s3110_s3 + $0x150] sm:$0xff] }
  0xd8   : > { %v941_v53 = vmul.f32 1.442695, %v931_v52  ;;  %v2064_v56 = vpop.eup %2063  ;;  %v1912_v52 = vld [vmem:[%s3119_s12 + $0xe0] sm:$0xff] }
  0xd9   : > { %v733_v55 = vpop.f32.mrf.mxu1  ;;  %v2066_v57 = vpop.eup %2065  ;;  %v947_v60 = vadd.f32 1.0, %v2064_v56  ;;  %1099 = vmatpush.msrb.mxu0 %v1083_v47  ;;  %v1910_v56 = vld [vmem:[%s3119_s12 + $0xd0] sm:$0xff]  ;;  %v1209_v47 = vld [vmem:[%s3110_s3] sm:$0xff] }
  0xda   : > { %2067 = vpow2.f32 %v941_v53  ;;  %v945_v0 = vadd.f32 1.0, %v2066_v57  ;;  %v741_v13 = vadd.f32 %v733_v55, %v653_v10  ;;  %v1080_v53 = vld [vmem:[%s3119_s12 + $0x48] sm:$0xff]  ;;  %v1079_v55 = vld [vmem:[%s3119_s12 + $0x40] sm:$0xff]  ;;  %v1078_v57 = vld [vmem:[%s3119_s12 + $0x38] sm:$0xff] }
  0xdb   : > { %1100 = vmatpush.msrb.mxu0 %v1082_v49  ;;  %v1087_v10 = vld [vmem:[%s3119_s12 + $0x80] sm:$0xff]  ;;  %v1958_v49 = vld [vmem:[%s3110_s3 + $0x148] sm:$0xff] }
  0xdc   : > { %v828_v19 = vadd.f32 %v820_v17, %v741_v13  ;;  %v1929_v17 = vld [vmem:[%s3110_s3 + $0x80] sm:$0xff] }
  0xdd   : > { %1101 = vmatpush.msrb.mxu0 %v1081_v51  ;;  %v1937_v51 = vld [vmem:[%s3110_s3 + $0xb0] sm:$0xff] }
  0xdf   : > { %1102 = vmatpush.msrb.mxu0 %v1080_v53  ;;  %v1957_v53 = vld [vmem:[%s3110_s3 + $0x140] sm:$0xff] }
  0xe0   : > { %v2068_v58 = vpop.eup %2067 }
  0xe1   : > { %v949_v61 = vadd.f32 1.0, %v2068_v58  ;;  %v900_v62 = vpop.f32.mrf.mxu1  ;;  %v1909_v58 = vld [vmem:[%s3119_s12 + $0xc8] sm:$0xff]  ;;  %1103 = vmatpush.msrb.mxu0 %v1079_v55  ;;  %v1950_v55 = vld [vmem:[%s3110_s3 + $0x110] sm:$0xff] }
  0xe2   : > { %v910_v7 = vadd.f32 %v900_v62, %v824_v4  ;;  %v1907_v62 = vld [vmem:[%s3119_s12 + $0xb8] sm:$0xff]  ;;  %v1904_v4 = vld [vmem:[%s3119_s12 + $0xa0] sm:$0xff] }
  0xe3   : > { %2069 = vrcp.f32 %v949_v61  ;;  %1104 = vmatpush.msrb.mxu0 %v1078_v57  ;;  %v1076_v61 = vld [vmem:[%s3119_s12 + $0x28] sm:$0xff]  ;;  %v1935_v57 = vld [vmem:[%s3110_s3 + $0xa0] sm:$0xff] }
  0xe4   : > { %2071 = vrcp.f32 %v947_v60  ;;  %v922_v18 = vadd.f32 %v918_v8, %v910_v7  ;;  %v1908_v60 = vld [vmem:[%s3119_s12 + $0xc0] sm:$0xff]  ;;  %v1903_v7 = vld [vmem:[%s3119_s12 + $0x98] sm:$0xff] }
  0xe5   : > { %2073 = vrcp.f32 %v945_v0  ;;  %1105 = vmatpush.msrb.mxu0 %v1077_v59  ;;  %v1906_v0 = vld [vmem:[%s3119_s12 + $0xb0] sm:$0xff] }
  0xe6   : > { %v928_v21 = vsub.f32 0.0, %v922_v18  ;;  %v1955_v59 = vld [vmem:[%s3110_s3 + $0x130] sm:$0xff] }
  0xe7   : > { %1106 = vmatpush.msrb.mxu0 %v1076_v61  ;;  %v1948_v61 = vld [vmem:[%s3110_s3 + $0x100] sm:$0xff] }
  0xe8   : > { %v935_v27 = vmul.f32 1.442695, %v928_v21 }
  0xe9   : > { %v2070_v6 = vpop.eup %2069  ;;  %v903_v9 = vpop.f32.mrf.mxu1  ;;  %1107 = vmatpush.msrb.mxu0 %v1075_v63  ;;  %v1933_v63 = vld [vmem:[%s3110_s3 + $0x90] sm:$0xff] }
  0xea   : > { %v912_v11 = vadd.f32 %v903_v9, %v826_v5  ;;  %979 = vmatpush.msra.mxu2 %v2070_v6  ;;  %v2072_v12 = vpop.eup %2071  ;;  %v1072_v5 = vld [vmem:[%s3119_s12 + $0x8] sm:$0xff]  ;;  %v1071_v9 = vld [vmem:[%s3119_s12] sm:$0xff] }
  0xeb   : > { %v2074_v16 = vpop.eup %2073  ;;  %1108 = vmatpush.msrb.mxu0 %v1074_v1  ;;  %v1953_v1 = vld [vmem:[%s3110_s3 + $0x120] sm:$0xff] }
  0xec   : > { %v924_v14 = vadd.f32 %v918_v8, %v912_v11  ;;  %980 = vmatpush.msra.mxu2 %v2072_v12  ;;  %v1902_v11 = vld [vmem:[%s3119_s12 + $0x90] sm:$0xff] }
  0xed   : > { %1109 = vmatpush.msrb.mxu0 %v1073_v3  ;;  %v1945_v3 = vld [vmem:[%s3110_s3 + $0xe8] sm:$0xff] }
  0xee   : > { %981 = vmatpush.msra.mxu2 %v2074_v16  ;;  %v930_v20 = vsub.f32 0.0, %v924_v14  ;;  %v1217_v14 = vld [vmem:[%s3110_s3 + $0x40] sm:$0xff] }
  0xef   : > { %1890 = vmatmul.msk.f32.vlgmr.msra.gmra.mxu2 %vm959_vm5, %v957_v15  ;;  %1110 = vmatpush.msrb.mxu0 %v1072_v5  ;;  %v1943_v5 = vld [vmem:[%s3110_s3 + $0xd8] sm:$0xff] }
  0xf0   : > { %v939_v24 = vmul.f32 1.442695, %v930_v20 }
  0xf1   : > { %v906_v22 = vpop.f32.mrf.mxu1  ;;  %1111 = vmatpush.msrb.mxu0 %v1071_v9 }
  0xf2   : > { %v914_v23 = vadd.f32 %v906_v22, %v828_v19  ;;  %2075 = vpow2.f32 %v939_v24  ;;  %v1215_v19 = vld [vmem:[%s3110_s3 + $0x30] sm:$0xff] }
  0xf3   : > { %2077 = vpow2.f32 %v935_v27  ;;  %1265 = vmatpush.msra.mxu0 %v1217_v14 }
  0xf4   : > { %v926_v25 = vadd.f32 %v918_v8, %v914_v23  ;;  %v1919_v8 = vld [vmem:[%s3119_s12 + $0x118] sm:$0xff] }
  0xf6   : > { %v932_v28 = vsub.f32 0.0, %v926_v25 }
  0xf7   : > { %1891 = vmatmul.msk.f32.gmra.mxu2 %vm959_vm5, %v958_v26 }
  0xf8   : > { %v943_v29 = vmul.f32 1.442695, %v932_v28  ;;  %v2076_v30 = vpop.eup %2075 }
  0xf9   : > { %v2078_v31 = vpop.eup %2077  ;;  %v948_v35 = vadd.f32 1.0, %v2076_v30  ;;  %v1928_v30 = vld [vmem:[%s3110_s3 + $0x78] sm:$0xff] }
  0xfa   : > { %2079 = vpow2.f32 %v943_v29  ;;  %v946_v37 = vadd.f32 1.0, %v2078_v31  ;;  %v1214_v31 = vld [vmem:[%s3110_s3 + $0x28] sm:$0xff] }
 0x100   : > { %v2080_v34 = vpop.eup %2079 }
 0x101   : > { %v950_v36 = vadd.f32 1.0, %v2080_v34  ;;  %v1926_v34 = vld [vmem:[%s3110_s3 + $0x68] sm:$0xff] }
 0x103   : > { %2081 = vrcp.f32 %v950_v36  ;;  %v1941_v36 = vld [vmem:[%s3110_s3 + $0xd0] sm:$0xff] }
 0x104   : > { %2083 = vrcp.f32 %v948_v35  ;;  %v1212_v35 = vld [vmem:[%s3110_s3 + $0x18] sm:$0xff] }
 0x105   : > { %2085 = vrcp.f32 %v946_v37  ;;  %v1961_v37 = vld [vmem:[%s3110_s3 + $0x160] sm:$0xff] }
 0x109   : > { %v2082_v38 = vpop.eup %2081 }
 0x10a   : > { %1002 = vmatpush.msrb.mxu2 %v2082_v38  ;;  %2020 = vmatpush.msra.mxu3 %v2082_v38  ;;  %v2084_v39 = vpop.eup %2083 }
 0x10b   : > { %v2086_v40 = vpop.eup %2085 }
 0x10c   : > { %1003 = vmatpush.msrb.mxu2 %v2084_v39  ;;  %2021 = vmatpush.msra.mxu3 %v2084_v39 }
 0x10e   : > { %1004 = vmatpush.msrb.mxu2 %v2086_v40  ;;  %2022 = vmatpush.msra.mxu3 %v2086_v40 }
 0x10f   : > { %1892 = vmatmul.msk.f32.vlgmr.msrb.gmra.mxu2 %vm959_vm5, %v957_v15  ;;  %1893 = vmatmul.msk.f32.vlgmr.msra.gmra.mxu3 %vm959_vm5, %v958_v26  ;;  %v1930_v15 = vld [vmem:[%s3110_s3 + $0x88] sm:$0xff] }
 0x110   : > { %1034 = vmatpush.msra.mxu2 %v2070_v6  ;;  %1057 = vmatpush.msrb.mxu3 %v2082_v38  ;;  %v1088_v6 = vld [vmem:[%s3119_s12 + $0x88] sm:$0xff]  ;;  %v1925_v38 = vld [vmem:[%s3110_s3 + $0x60] sm:$0xff] }
 0x111   : > { %1133 = vmatpush.msra.mxu1 %v1088_v6 }
 0x112   : > { %1035 = vmatpush.msra.mxu2 %v2072_v12  ;;  %1058 = vmatpush.msrb.mxu3 %v2084_v39  ;;  %v1918_v12 = vld [vmem:[%s3119_s12 + $0x110] sm:$0xff] }
 0x113   : > { %1134 = vmatpush.msra.mxu1 %v1087_v10  ;;  %v1211_v39 = vld [vmem:[%s3110_s3 + $0x10] sm:$0xff] }
 0x114   : > { %1036 = vmatpush.msra.mxu2 %v2074_v16  ;;  %1059 = vmatpush.msrb.mxu3 %v2086_v40  ;;  %v1216_v16 = vld [vmem:[%s3110_s3 + $0x38] sm:$0xff]  ;;  %v1940_v40 = vld [vmem:[%s3110_s3 + $0xc8] sm:$0xff] }
 0x115   : > { %1243 = vmatpush.msrb.mxu1 %v1930_v15  ;;  %1266 = vmatpush.msra.mxu0 %v1216_v16 }
 0x116   : > { %1161 = vmatpush.msrb.mxu2 %v1917_v41  ;;  %1198 = vmatpush.msra.mxu3 %v1919_v8  ;;  %v1960_v41 = vld [vmem:[%s3110_s3 + $0x158] sm:$0xff] }
 0x117   : > { %1896 = vmatmul.msk.f32.vlgmr.msra.gmra.mxu2 %vm959_vm5, %v1894_v42  ;;  %1898 = vmatmul.msk.f32.vlgmr.msrb.gmra.mxu3 %vm959_vm5, %v1894_v42  ;;  %v1924_v42 = vld [vmem:[%s3110_s3 + $0x58] sm:$0xff] }
 0x118   : > { %1162 = vmatpush.msrb.mxu2 %v1916_v43  ;;  %1199 = vmatpush.msra.mxu3 %v1918_v12  ;;  %v1210_v43 = vld [vmem:[%s3110_s3 + $0x8] sm:$0xff] }
 0x119   : > { %1244 = vmatpush.msrb.mxu1 %v1929_v17  ;;  %1267 = vmatpush.msra.mxu0 %v1215_v19 }
 0x11a   : > { %1163 = vmatpush.msrb.mxu2 %v1915_v46  ;;  %1300 = vmatpush.msrb.mxu3 %v1941_v36  ;;  %v1923_v46 = vld [vmem:[%s3110_s3 + $0x50] sm:$0xff] }
 0x11b   : > { %1245 = vmatpush.msrb.mxu1 %v1928_v30  ;;  %1268 = vmatpush.msra.mxu0 %v1214_v31 }
 0x11c   : > { %1164 = vmatpush.msrb.mxu2 %v1914_v48  ;;  %1301 = vmatpush.msrb.mxu3 %v1940_v40  ;;  %v1938_v48 = vld [vmem:[%s3110_s3 + $0xb8] sm:$0xff] }
 0x11d   : > { %1246 = vmatpush.msrb.mxu1 %v1927_v32  ;;  %1269 = vmatpush.msra.mxu0 %v1213_v33 }
 0x11e   : > { %1165 = vmatpush.msrb.mxu2 %v1913_v50  ;;  %v1922_v50 = vld [vmem:[%s3110_s3 + $0x48] sm:$0xff] }
 0x11f   : > { %1897 = vmatmul.msk.f32.gmra.mxu2 %vm959_vm5, %v1895_v44  ;;  %1899 = vmatmul.msk.f32.gmra.mxu3 %vm959_vm5, %v1895_v44  ;;  %v1939_v44 = vld [vmem:[%s3110_s3 + $0xc0] sm:$0xff] }
 0x120   : > { %1166 = vmatpush.msrb.mxu2 %v1912_v52  ;;  %1247 = vmatpush.msrb.mxu1 %v1926_v34  ;;  %v1951_v52 = vld [vmem:[%s3110_s3 + $0x118] sm:$0xff] }
 0x121   : > { %1270 = vmatpush.msra.mxu0 %v1212_v35  ;;  %1302 = vmatpush.msrb.mxu3 %v1939_v44 }
 0x122   : > { %1167 = vmatpush.msrb.mxu2 %v1911_v54  ;;  %1248 = vmatpush.msrb.mxu1 %v1925_v38  ;;  %v1936_v54 = vld [vmem:[%s3110_s3 + $0xa8] sm:$0xff] }
 0x123   : > { %1271 = vmatpush.msra.mxu0 %v1211_v39  ;;  %1303 = vmatpush.msrb.mxu3 %v1938_v48  ;;  %v2062_v39 = vld [vmem:[%s3111_s4] ss:$0 sm:$0xff] }
 0x124   : > { %1168 = vmatpush.msrb.mxu2 %v1910_v56  ;;  %1249 = vmatpush.msrb.mxu1 %v1924_v42  ;;  %v1956_v56 = vld [vmem:[%s3110_s3 + $0x138] sm:$0xff]  ;;  %v1396_v48 = vld [vmem:[%s3120_s13] sm:$0xf] }
 0x125   : > { %1272 = vmatpush.msra.mxu0 %v1210_v43  ;;  %1304 = vmatpush.msrb.mxu3 %v1937_v51  ;;  %v1462_v51 = vld [vmem:[%s3121_s14 + $0x78] sm:$0xff] }
 0x126   : > { %1169 = vmatpush.msrb.mxu2 %v1909_v58  ;;  %1250 = vmatpush.msrb.mxu1 %v1923_v46  ;;  %v1949_v58 = vld [vmem:[%s3110_s3 + $0x108] sm:$0xff] }
 0x127   : > { %1273 = vmatpush.msra.mxu0 %v1209_v47  ;;  %1305 = vmatpush.msrb.mxu3 %v1936_v54  ;;  %v1964_v47 = vld [vmem:[%s3120_s13 + $0x4] sm:$0xf]  ;;  %v1979_v54 = vld [vmem:[%s3121_s14 + $0xe8] sm:$0xff] }
 0x128   : > { %1170 = vmatpush.msrb.mxu2 %v1908_v60  ;;  %1251 = vmatpush.msrb.mxu1 %v1922_v50  ;;  %v1934_v60 = vld [vmem:[%s3110_s3 + $0x98] sm:$0xff] }
 0x129   : > { %1306 = vmatpush.msrb.mxu3 %v1935_v57  ;;  %v1981_v50 = vld [vmem:[%s3121_s14 + $0xf8] sm:$0xff]  ;;  %v1459_v57 = vld [vmem:[%s3121_s14 + $0x60] sm:$0xff] }
 0x12a   : > { %1171 = vmatpush.msrb.mxu2 %v1907_v62  ;;  %v1954_v62 = vld [vmem:[%s3110_s3 + $0x128] sm:$0xff] }
 0x12b   : > { %1307 = vmatpush.msrb.mxu3 %v1934_v60  ;;  %v1976_v60 = vld [vmem:[%s3121_s14 + $0xd0] sm:$0xff] }
 0x12c   : > { %1172 = vmatpush.msrb.mxu2 %v1906_v0  ;;  %v1947_v0 = vld [vmem:[%s3110_s3 + $0xf8] sm:$0xff] }
 0x12d   : > { %1308 = vmatpush.msrb.mxu3 %v1933_v63  ;;  %v1456_v63 = vld [vmem:[%s3121_s14 + $0x48] sm:$0xff] }
 0x12e   : > { %1173 = vmatpush.msrb.mxu2 %v1905_v2  ;;  %v1946_v2 = vld [vmem:[%s3110_s3 + $0xf0] sm:$0xff] }
 0x130   : > { %1174 = vmatpush.msrb.mxu2 %v1904_v4  ;;  %v1944_v4 = vld [vmem:[%s3110_s3 + $0xe0] sm:$0xff] }
 0x132   : > { %1175 = vmatpush.msrb.mxu2 %v1903_v7 }
 0x134   : > { %1176 = vmatpush.msrb.mxu2 %v1902_v11 }
 0x136   : > { %1372 = vmatpush.msra.mxu2 %v1961_v37 }
 0x138   : > { %1373 = vmatpush.msra.mxu2 %v1960_v41 }
 0x13a   : > { %1374 = vmatpush.msra.mxu2 %v1959_v45 }
 0x13c   : > { %1375 = vmatpush.msra.mxu2 %v1958_v49 }
 0x13e   : > { %1376 = vmatpush.msra.mxu2 %v1957_v53  ;;  %v1461_v53 = vld [vmem:[%s3121_s14 + $0x70] sm:$0xff] }
 0x140   : > { %1377 = vmatpush.msra.mxu2 %v1956_v56  ;;  %v1978_v56 = vld [vmem:[%s3121_s14 + $0xe0] sm:$0xff] }
 0x142   : > { %1378 = vmatpush.msra.mxu2 %v1955_v59  ;;  %v1458_v59 = vld [vmem:[%s3121_s14 + $0x58] sm:$0xff] }
 0x144   : > { %1379 = vmatpush.msra.mxu2 %v1954_v62  ;;  %v1975_v62 = vld [vmem:[%s3121_s14 + $0xc8] sm:$0xff] }
 0x146   : > { %1380 = vmatpush.msra.mxu2 %v1953_v1  ;;  %v1455_v1 = vld [vmem:[%s3121_s14 + $0x40] sm:$0xff] }
 0x172   : > { %v983_v13 = vpop.f32.mrf.mxu2 }
 0x17a   : > { %v986_v18 = vpop.f32.mrf.mxu2 }
 0x192   : > { %v1006_v20 = vpop.f32.mrf.mxu2  ;;  %v1009_v21 = vpop.f32.mrf.mxu3 }
 0x19a   : > { %v1038_v22 = vpop.f32.mrf.mxu2  ;;  %v1061_v23 = vpop.f32.mrf.mxu3 }
 0x19b   : > { %v1067_v24 = vmax.f32 %v983_v13, %v1038_v22  ;;  %v1068_v25 = vmax.f32 %v1006_v20, %v1061_v23 }
 0x19d   : > { %1112 = vmatmul.f32.vlgmr.msrb.gmra.mxu0 %v1067_v24  ;;  %1900 = vmatmul.msk.f32.vlgmr.msra.gmra.mxu1 %vm1089_vm6, %v1068_v25 }
 0x19e   : > { %1177 = vmatmul.f32.vlgmr.msrb.gmra.mxu2 %v1067_v24  ;;  %1920 = vmatmul.msk.f32.vlgmr.msra.gmra.mxu3 %vm1089_vm6, %v1068_v25 }
 0x19f   : > { %1336 = vmatpush.msra.mxu1 %v1951_v52  ;;  %v1980_v52 = vld [vmem:[%s3121_s14 + $0xf0] sm:$0xff] }
 0x1a1   : > { %1337 = vmatpush.msra.mxu1 %v1950_v55  ;;  %v1460_v55 = vld [vmem:[%s3121_s14 + $0x68] sm:$0xff] }
 0x1a2   : > { %v1041_v26 = vpop.f32.mrf.mxu2  ;;  %v1064_v27 = vpop.f32.mrf.mxu3 }
 0x1a3   : > { %v1069_v28 = vmax.f32 %v986_v18, %v1041_v26  ;;  %v1070_v29 = vmax.f32 %v1009_v21, %v1064_v27  ;;  %1338 = vmatpush.msra.mxu1 %v1949_v58  ;;  %v1977_v58 = vld [vmem:[%s3121_s14 + $0xd8] sm:$0xff] }
 0x1a5   : > { %1115 = vmatmul.f32.gmra.mxu0 %v1069_v28  ;;  %1901 = vmatmul.msk.f32.gmra.mxu1 %vm1089_vm6, %v1070_v29 }
 0x1a6   : > { %1180 = vmatmul.f32.gmra.mxu2 %v1069_v28  ;;  %1921 = vmatmul.msk.f32.gmra.mxu3 %vm1089_vm6, %v1070_v29 }
 0x1a7   : > { %1339 = vmatpush.msra.mxu1 %v1948_v61  ;;  %v1457_v61 = vld [vmem:[%s3121_s14 + $0x50] sm:$0xff] }
 0x1a9   : > { %1340 = vmatpush.msra.mxu1 %v1947_v0  ;;  %v1974_v0 = vld [vmem:[%s3121_s14 + $0xc0] sm:$0xff] }
 0x1ab   : > { %1341 = vmatpush.msra.mxu1 %v1946_v2  ;;  %v1973_v2 = vld [vmem:[%s3121_s14 + $0xb8] sm:$0xff] }
 0x1ad   : > { %1342 = vmatpush.msra.mxu1 %v1945_v3  ;;  %v1454_v3 = vld [vmem:[%s3121_s14 + $0x38] sm:$0xff] }
 0x1af   : > { %1343 = vmatpush.msra.mxu1 %v1944_v4  ;;  %v1972_v4 = vld [vmem:[%s3121_s14 + $0xb0] sm:$0xff] }
 0x1b1   : > { %1344 = vmatpush.msra.mxu1 %v1943_v5  ;;  %v1453_v5 = vld [vmem:[%s3121_s14 + $0x30] sm:$0xff] }
 0x21a   : > { %v1113_v6 = vpop.f32.mrf.mxu0  ;;  %v1136_v7 = vpop.f32.mrf.mxu1 }
 0x21b   : > { %v1137_v10 = vadd.f32 %v1136_v7, %v1113_v6  ;;  %v1971_v6 = vld [vmem:[%s3121_s14 + $0xa8] sm:$0xff] }
 0x21c   : > { %v1452_v7 = vld [vmem:[%s3121_s14 + $0x28] sm:$0xff] }
 0x221   : > { %v1178_v8 = vpop.f32.mrf.mxu2  ;;  %v1201_v9 = vpop.f32.mrf.mxu3 }
 0x222   : > { %v1202_v11 = vadd.f32 %v1201_v9, %v1178_v8  ;;  %v1116_v13 = vpop.f32.mrf.mxu0  ;;  %v1139_v14 = vpop.f32.mrf.mxu1  ;;  %v1970_v8 = vld [vmem:[%s3121_s14 + $0xa0] sm:$0xff]  ;;  %v1969_v9 = vld [vmem:[%s3121_s14 + $0x98] sm:$0xff] }
 0x223   : > { %v1140_v17 = vadd.f32 %v1139_v14, %v1116_v13  ;;  %v1449_v13 = vld [vmem:[%s3121_s14 + $0x10] sm:$0xff]  ;;  %v1967_v14 = vld [vmem:[%s3121_s14 + $0x88] sm:$0xff] }
 0x224   : > { %v1207_v12 = vmax.f32 %v1137_v10, %v1202_v11  ;;  %v1968_v10 = vld [vmem:[%s3121_s14 + $0x90] sm:$0xff]  ;;  %v1451_v11 = vld [vmem:[%s3121_s14 + $0x20] sm:$0xff] }
 0x226   : > { %1932 = vmatmul.msk.f32.vlgmr.msra.gmra.mxu0 %vm1233_vm7, %v1207_v12  ;;  %v1230_v20 = vrot.slane %v1207_v12, 1  ;;  %v1288_v21 = vrot.slane %v1207_v12, 2  ;;  %v1360_v24 = vrot.slane %v1207_v12, 4  ;;  %v1324_v30 = vrot.slane %v1207_v12, 3  ;;  %v1450_v12 = vld [vmem:[%s3121_s14 + $0x18] sm:$0xff] }
 0x229   : > { %v1181_v15 = vpop.f32.mrf.mxu2  ;;  %v1204_v16 = vpop.f32.mrf.mxu3 }
 0x22a   : > { %v1205_v18 = vadd.f32 %v1204_v16, %v1181_v15  ;;  %v1448_v15 = vld [vmem:[%s3121_s14 + $0x8] sm:$0xff]  ;;  %v1966_v16 = vld [vmem:[%s3121_s14 + $0x80] sm:$0xff] }
 0x22c   : > { %v1208_v19 = vmax.f32 %v1140_v17, %v1205_v18  ;;  %v1447_v17 = vld [vmem:[%s3121_s14] sm:$0xff]  ;;  %v1990_v18 = vld [vmem:[%s3112_s5 + $0x78] sm:$0xff] }
 0x22d   : > { %1575 = vmatpush.msrb.mxu2 %v1990_v18 }
 0x22e   : > { %v1231_v22 = vrot.slane %v1208_v19, 1  ;;  %v1289_v23 = vrot.slane %v1208_v19, 2  ;;  %v1361_v25 = vrot.slane %v1208_v19, 4  ;;  %v1325_v29 = vrot.slane %v1208_v19, 3  ;;  %v1989_v19 = vld [vmem:[%s3112_s5 + $0x70] sm:$0xff] }
 0x22f   : > { %1576 = vmatpush.msrb.mxu2 %v1989_v19 }
 0x230   : > { %v1232_v26 = vsel %vm517_vm2, %v1230_v20, %v1231_v22  ;;  %v1290_v27 = vsel %vm664_vm3, %v1288_v21, %v1289_v23  ;;  %v1362_v28 = vsel %vm532_vm0, %v1360_v24, %v1361_v25  ;;  %v1326_v31 = vsel %vm751_vm4, %v1324_v30, %v1325_v29  ;;  %v1529_v20 = vld [vmem:[%s3112_s5 + $0x38] sm:$0xff]  ;;  %v1528_v21 = vld [vmem:[%s3112_s5 + $0x30] sm:$0xff]  ;;  %v1988_v22 = vld [vmem:[%s3112_s5 + $0x68] sm:$0xff] }
 0x231   : > { %1931 = vmatmul.msk.f32.vlgmr.msrb.gmra.mxu1 %vm1233_vm7, %v1232_v26  ;;  %1942 = vmatmul.msk.f32.vlgmr.msrb.gmra.mxu3 %vm1233_vm7, %v1290_v27  ;;  %v1527_v23 = vld [vmem:[%s3112_s5 + $0x28] sm:$0xff]  ;;  %v1987_v24 = vld [vmem:[%s3112_s5 + $0x60] sm:$0xff]  ;;  %v1986_v26 = vld [vmem:[%s3112_s5 + $0x58] sm:$0xff] }
 0x232   : > { %1962 = vmatmul.msk.f32.vlgmr.msra.gmra.mxu2 %vm1233_vm7, %v1362_v28  ;;  %1542 = vmatpush.msrb.mxu1 %v1529_v20  ;;  %v1526_v25 = vld [vmem:[%s3112_s5 + $0x20] sm:$0xff]  ;;  %v1525_v27 = vld [vmem:[%s3112_s5 + $0x18] sm:$0xff]  ;;  %v1985_v28 = vld [vmem:[%s3112_s5 + $0x50] sm:$0xff] }
 0x233   : > { %1577 = vmatpush.msrb.mxu2 %v1988_v22  ;;  %v1524_v29 = vld [vmem:[%s3112_s5 + $0x10] sm:$0xff]  ;;  %v1984_v30 = vld [vmem:[%s3112_s5 + $0x48] sm:$0xff] }
 0x234   : > { %1543 = vmatpush.msrb.mxu1 %v1528_v21 }
 0x235   : > { %1578 = vmatpush.msrb.mxu2 %v1987_v24  ;;  %v1714_v24 = vld [vmem:[%s3116_s9 + $0x50] sm:$0xf] }
 0x236   : > { %1544 = vmatpush.msrb.mxu1 %v1527_v23 }
 0x237   : > { %1579 = vmatpush.msrb.mxu2 %v1986_v26  ;;  %v1712_v26 = vld [vmem:[%s3116_s9 + $0x40] sm:$0xff] }
 0x238   : > { %1545 = vmatpush.msrb.mxu1 %v1526_v25  ;;  %v1713_v25 = vld [vmem:[%s3116_s9 + $0x48] sm:$0xff] }
 0x239   : > { %1952 = vmatmul.msk.f32.vlgmr.msra.gmra.mxu1 %vm1233_vm7, %v1326_v31  ;;  %v1523_v31 = vld [vmem:[%s3112_s5 + $0x8] sm:$0xff]  ;;  %1580 = vmatpush.msrb.mxu2 %v1985_v28  ;;  %v1710_v28 = vld [vmem:[%s3116_s9 + $0x30] sm:$0xff] }
 0x23a   : > { %1546 = vmatpush.msrb.mxu1 %v1525_v27  ;;  %v1711_v27 = vld [vmem:[%s3116_s9 + $0x38] sm:$0xff] }
 0x23b   : > { %1581 = vmatpush.msrb.mxu2 %v1984_v30  ;;  %v1708_v30 = vld [vmem:[%s3116_s9 + $0x20] sm:$0xff] }
 0x23c   : > { %1547 = vmatpush.msrb.mxu1 %v1524_v29  ;;  %v1709_v29 = vld [vmem:[%s3116_s9 + $0x28] sm:$0xff] }
 0x23e   : > { %1548 = vmatpush.msrb.mxu1 %v1523_v31  ;;  %v1707_v31 = vld [vmem:[%s3116_s9 + $0x18] sm:$0xff] }
 0x2a3   : > { %v1275_v33 = vpop.f32.mrf.mxu0 }
 0x2ae   : > { %v1253_v32 = vpop.f32.mrf.mxu1 }
 0x2af   : > { %v1276_v34 = vadd.f32 %v1275_v33, %v1253_v32  ;;  %v1983_v32 = vld [vmem:[%s3112_s5 + $0x40] sm:$0xff]  ;;  %v2008_v33 = vld [vmem:[%s3112_s5 + $0xf8] sm:$0xff] }
 0x2b0   : > { %1582 = vmatpush.msrb.mxu2 %v1983_v32  ;;  %v1706_v32 = vld [vmem:[%s3116_s9 + $0x10] sm:$0xff] }
 0x2b2   : > { %1641 = vmatpush.msra.mxu2 %v2008_v33  ;;  %v1705_v33 = vld [vmem:[%s3116_s9 + $0x8] sm:$0xff] }
 0x2b4   : > { %v1310_v35 = vpop.f32.mrf.mxu3 }
 0x2b5   : > { %v1313_v36 = vadd.f32 %v1310_v35, %v1276_v34  ;;  %v1382_v40 = vpop.f32.mrf.mxu2 }
 0x2b6   : > { %v1346_v37 = vpop.f32.mrf.mxu1 }
 0x2b7   : > { %v1349_v38 = vadd.f32 %v1346_v37, %v1313_v36  ;;  %v1522_v37 = vld [vmem:[%s3112_s5] sm:$0xff] }
 0x2b8   : > { %1549 = vmatpush.msrb.mxu1 %v1522_v37 }
 0x2b9   : > { %v1385_v41 = vadd.f32 %v1382_v40, %v1349_v38  ;;  %v1999_v38 = vld [vmem:[%s3112_s5 + $0xb8] sm:$0xff]  ;;  %v2007_v40 = vld [vmem:[%s3112_s5 + $0xf0] sm:$0xff] }
 0x2ba   : > { %1608 = vmatpush.msra.mxu1 %v1999_v38  ;;  %1642 = vmatpush.msra.mxu2 %v2007_v40 }
 0x2bb   : > { %v1390_v42 = vadd.f32 %v2062_v39, %v1385_v41  ;;  %v1998_v39 = vld [vmem:[%s3112_s5 + $0xb0] sm:$0xff]  ;;  %v1997_v41 = vld [vmem:[%s3112_s5 + $0xa8] sm:$0xff] }
 0x2bc   : > { %1609 = vmatpush.msra.mxu1 %v1998_v39 }
 0x2bd   : > { %v1391_v43 = vsub.f32 0.0, %v1390_v42  ;;  %v2006_v42 = vld [vmem:[%s3112_s5 + $0xe8] sm:$0xff] }
 0x2be   : > { %1610 = vmatpush.msra.mxu1 %v1997_v41  ;;  %1643 = vmatpush.msra.mxu2 %v2006_v42 }
 0x2bf   : > { %v1392_v44 = vmul.f32 1.442695, %v1391_v43  ;;  %v1996_v43 = vld [vmem:[%s3112_s5 + $0xa0] sm:$0xff] }
 0x2c0   : > { %1611 = vmatpush.msra.mxu1 %v1996_v43  ;;  %v1715_v43 = vld [vmem:[%s3117_s10] sm:$0x1] }
 0x2c1   : > { %2087 = vpow2.f32 %v1392_v44  ;;  %v2005_v44 = vld [vmem:[%s3112_s5 + $0xe0] sm:$0xff] }
 0x2c2   : > { %1644 = vmatpush.msra.mxu2 %v2005_v44 }
 0x2c7   : > { %v2088_v45 = vpop.eup %2087 }
 0x2c8   : > { %v1394_v46 = vadd.f32 1.0, %v2088_v45  ;;  %v1995_v45 = vld [vmem:[%s3112_s5 + $0x98] sm:$0xff] }
 0x2c9   : > { %1612 = vmatpush.msra.mxu1 %v1995_v45 }
 0x2ca   : > { %2089 = vrcp.f32 %v1394_v46  ;;  %v2004_v46 = vld [vmem:[%s3112_s5 + $0xd8] sm:$0xff] }
 0x2cb   : > { %1645 = vmatpush.msra.mxu2 %v2004_v46 }
 0x2d0   : > { %v2090_v49 = vpop.eup %2089 }
 0x2d1   : > { %1416 = vmatpush.msrb.mxu0 %v2090_v49  ;;  %1441 = vmatpush.msra.mxu3 %v2090_v49  ;;  %v2002_v49 = vld [vmem:[%s3112_s5 + $0xc8] sm:$0xff] }
 0x2d2   : > { %1965 = vmatmul.msk.f32.vlgmr.msra.gmra.mxu3 %vm1397_vm8, %v1964_v47  ;;  %1963 = vmatmul.msk.f32.vlgmr.msrb.gmra.mxu0 %vm1397_vm8, %v1396_v48  ;;  %v2003_v47 = vld [vmem:[%s3112_s5 + $0xd0] sm:$0xff] }
 0x2d3   : > { %1500 = vmatpush.msrb.mxu3 %v1981_v50  ;;  %1463 = vmatpush.msra.mxu0 %v1462_v51  ;;  %v1994_v48 = vld [vmem:[%s3112_s5 + $0x90] sm:$0xff]  ;;  %v1993_v50 = vld [vmem:[%s3112_s5 + $0x88] sm:$0xff]  ;;  %v2001_v51 = vld [vmem:[%s3112_s5 + $0xc0] sm:$0xff] }
 0x2d4   : > { %1613 = vmatpush.msra.mxu1 %v1994_v48  ;;  %1646 = vmatpush.msra.mxu2 %v2003_v47 }
 0x2d5   : > { %1501 = vmatpush.msrb.mxu3 %v1980_v52  ;;  %1464 = vmatpush.msra.mxu0 %v1461_v53  ;;  %v1992_v52 = vld [vmem:[%s3112_s5 + $0x80] sm:$0xff] }
 0x2d6   : > { %1614 = vmatpush.msra.mxu1 %v1993_v50  ;;  %1647 = vmatpush.msra.mxu2 %v2002_v49 }
 0x2d7   : > { %1502 = vmatpush.msrb.mxu3 %v1979_v54  ;;  %1465 = vmatpush.msra.mxu0 %v1460_v55 }
 0x2d8   : > { %1615 = vmatpush.msra.mxu1 %v1992_v52  ;;  %1648 = vmatpush.msra.mxu2 %v2001_v51 }
 0x2d9   : > { %1503 = vmatpush.msrb.mxu3 %v1978_v56  ;;  %1466 = vmatpush.msra.mxu0 %v1459_v57 }
 0x2db   : > { %1504 = vmatpush.msrb.mxu3 %v1977_v58  ;;  %1467 = vmatpush.msra.mxu0 %v1458_v59  ;;  %v1673_v59 = vld [vmem:[%s3114_s7 + $0x70] sm:$0xff] }
 0x2dd   : > { %1505 = vmatpush.msrb.mxu3 %v1976_v60  ;;  %1468 = vmatpush.msra.mxu0 %v1457_v61  ;;  %v1672_v60 = vld [vmem:[%s3114_s7 + $0x68] sm:$0xff]  ;;  %v1671_v61 = vld [vmem:[%s3114_s7 + $0x60] sm:$0xff] }
 0x2df   : > { %1506 = vmatpush.msrb.mxu3 %v1975_v62  ;;  %1469 = vmatpush.msra.mxu0 %v1456_v63  ;;  %v1670_v62 = vld [vmem:[%s3114_s7 + $0x58] sm:$0xff]  ;;  %v1669_v63 = vld [vmem:[%s3114_s7 + $0x50] sm:$0xff] }
 0x2e1   : > { %1507 = vmatpush.msrb.mxu3 %v1974_v0  ;;  %1470 = vmatpush.msra.mxu0 %v1455_v1  ;;  %v1668_v0 = vld [vmem:[%s3114_s7 + $0x48] sm:$0xff]  ;;  %v1667_v1 = vld [vmem:[%s3114_s7 + $0x40] sm:$0xff] }
 0x2e3   : > { %1508 = vmatpush.msrb.mxu3 %v1973_v2  ;;  %1471 = vmatpush.msra.mxu0 %v1454_v3  ;;  %v1666_v2 = vld [vmem:[%s3114_s7 + $0x38] sm:$0xff]  ;;  %v1665_v3 = vld [vmem:[%s3114_s7 + $0x30] sm:$0xff] }
 0x2e5   : > { %1509 = vmatpush.msrb.mxu3 %v1972_v4  ;;  %1472 = vmatpush.msra.mxu0 %v1453_v5  ;;  %v1664_v4 = vld [vmem:[%s3114_s7 + $0x28] sm:$0xff]  ;;  %v1663_v5 = vld [vmem:[%s3114_s7 + $0x20] sm:$0xff] }
 0x2e7   : > { %1510 = vmatpush.msrb.mxu3 %v1971_v6  ;;  %1473 = vmatpush.msra.mxu0 %v1452_v7  ;;  %v1662_v6 = vld [vmem:[%s3114_s7 + $0x18] sm:$0xff]  ;;  %v1661_v7 = vld [vmem:[%s3114_s7 + $0x10] sm:$0xff] }
 0x2e9   : > { %1511 = vmatpush.msrb.mxu3 %v1970_v8  ;;  %1474 = vmatpush.msra.mxu0 %v1451_v11  ;;  %v1660_v8 = vld [vmem:[%s3114_s7 + $0x8] sm:$0xff]  ;;  %v1521_v11 = vld [vmem:[%s3113_s6] sm:$0x1] }
 0x2eb   : > { %1512 = vmatpush.msrb.mxu3 %v1969_v9  ;;  %1475 = vmatpush.msra.mxu0 %v1450_v12 }
 0x2ed   : > { %1513 = vmatpush.msrb.mxu3 %v1968_v10  ;;  %1476 = vmatpush.msra.mxu0 %v1449_v13  ;;  %v1659_v10 = vld [vmem:[%s3114_s7] sm:$0xff] }
 0x2ef   : > { %1514 = vmatpush.msrb.mxu3 %v1967_v14  ;;  %1477 = vmatpush.msra.mxu0 %v1448_v15 }
 0x2f1   : > { %1515 = vmatpush.msrb.mxu3 %v1966_v16  ;;  %1478 = vmatpush.msra.mxu0 %v1447_v17 }
 0x2f3   : > { %1680 = vmatpush.msrb.mxu0 %v1673_v59  ;;  %2011 = vmatpush.msk.msra.mxu3 %vm532_vm0, %v1714_v24 }
 0x2f5   : > { %1681 = vmatpush.msrb.mxu0 %v1672_v60  ;;  %1729 = vmatpush.msra.mxu3 %v1713_v25 }
 0x2f7   : > { %1682 = vmatpush.msrb.mxu0 %v1671_v61  ;;  %1730 = vmatpush.msra.mxu3 %v1712_v26 }
 0x2f9   : > { %1683 = vmatpush.msrb.mxu0 %v1670_v62  ;;  %1731 = vmatpush.msra.mxu3 %v1711_v27 }
 0x2fb   : > { %1684 = vmatpush.msrb.mxu0 %v1669_v63  ;;  %1732 = vmatpush.msra.mxu3 %v1710_v28 }
 0x2fd   : > { %1685 = vmatpush.msrb.mxu0 %v1668_v0  ;;  %1733 = vmatpush.msra.mxu3 %v1709_v29 }
 0x2ff   : > { %1686 = vmatpush.msrb.mxu0 %v1667_v1  ;;  %1734 = vmatpush.msra.mxu3 %v1708_v30 }
 0x301   : > { %1687 = vmatpush.msrb.mxu0 %v1666_v2  ;;  %1735 = vmatpush.msra.mxu3 %v1707_v31 }
 0x303   : > { %1688 = vmatpush.msrb.mxu0 %v1665_v3  ;;  %1736 = vmatpush.msra.mxu3 %v1706_v32 }
 0x305   : > { %1689 = vmatpush.msrb.mxu0 %v1664_v4  ;;  %1737 = vmatpush.msra.mxu3 %v1705_v33 }
 0x307   : > { %1690 = vmatpush.msrb.mxu0 %v1663_v5 }
 0x309   : > { %1691 = vmatpush.msrb.mxu0 %v1662_v6 }
 0x30b   : > { %1692 = vmatpush.msrb.mxu0 %v1661_v7 }
 0x30d   : > { %1693 = vmatpush.msrb.mxu0 %v1660_v8 }
 0x30f   : > { %1694 = vmatpush.msrb.mxu0 %v1659_v10 }
 0x34f   : > { %v1418_v34 = vpop.f32.mrf.mxu0 }
 0x355   : > { %v1443_v35 = vpop.f32.mrf.mxu3 }
 0x356   : > { %v1446_v36 = vmax.f32 %v1418_v34, %v1443_v35  ;;  %v1704_v34 = vld [vmem:[%s3116_s9] sm:$0xff] }
 0x357   : > { %1738 = vmatpush.msra.mxu3 %v1704_v34  ;;  %v1674_v35 = vld [vmem:[%s3115_s8] sm:$0x1] }
 0x358   : > { %1516 = vmatmul.f32.vlgmr.msrb.gmra.mxu3 %v1446_v36  ;;  %1479 = vmatmul.f32.vlgmr.msra.gmra.mxu0 %v1446_v36 }
 0x3d5   : > { %v1480_v53 = vpop.f32.mrf.mxu0 }
 0x3db   : > { %v1517_v54 = vpop.f32.mrf.mxu3 }
 0x3dc   : > { %v1520_v55 = vmax.f32 %v1480_v53, %v1517_v54 }
 0x3de   : > { %v1564_v56 = vrot.slane %v1520_v55, 1  ;;  %1982 = vmatmul.msk.f32.vlgmr.msrb.gmra.mxu1 %vm1530_vm9, %v1520_v55  ;;  %v1597_v57 = vrot.slane %v1520_v55, 2  ;;  %v1630_v58 = vrot.slane %v1520_v55, 3 }
 0x3e0   : > { %1991 = vmatmul.msk.f32.vlgmr.msrb.gmra.mxu2 %vm1530_vm9, %v1564_v56 }
 0x3e6   : > { %2000 = vmatmul.msk.f32.vlgmr.msra.gmra.mxu1 %vm1530_vm9, %v1597_v57 }
 0x3e8   : > { %2009 = vmatmul.msk.f32.vlgmr.msra.gmra.mxu2 %vm1530_vm9, %v1630_v58 }
 0x45b   : > { %v1551_v9 = vpop.f32.mrf.mxu1 }
 0x45c   : > { %v1554_v13 = vadd.f32 %v1551_v9, %v1521_v11 }
 0x463   : > { %v1584_v12 = vpop.f32.mrf.mxu2  ;;  %v1617_v15 = vpop.f32.mrf.mxu1 }
 0x464   : > { %v1587_v14 = vadd.f32 %v1584_v12, %v1554_v13 }
 0x466   : > { %v1620_v16 = vadd.f32 %v1617_v15, %v1587_v14 }
 0x46b   : > { %v1650_v17 = vpop.f32.mrf.mxu2 }
 0x46c   : > { %v1653_v18 = vadd.f32 %v1650_v17, %v1620_v16 }
 0x46e   : > { %v1654_v19 = vsub.f32 0.0, %v1653_v18 }
 0x470   : > { %v1655_v20 = vmul.f32 1.442695, %v1654_v19 }
 0x472   : > { %2091 = vpow2.f32 %v1655_v20 }
 0x478   : > { %v2092_v21 = vpop.eup %2091 }
 0x479   : > { %v1657_v22 = vadd.f32 1.0, %v2092_v21 }
 0x47b   : > { %2093 = vrcp.f32 %v1657_v22 }
 0x481   : > { %v2094_v23 = vpop.eup %2093 }
 0x482   : > { %2010 = vmatmul.msk.f32.vlgmr.msrb.gmra.mxu0 %vm1675_vm10, %v2094_v23 }
 0x4ff   : > { %v1696_v36 = vpop.f32.mrf.mxu0 }
 0x500   : > { %v1697_v37 = vadd.f32 %v1696_v36, %v1674_v35 }
 0x502   : > { %v1699_v38 = vsub.f32 0.0, %v1697_v37 }
 0x504   : > { %v1700_v39 = vmul.f32 1.442695, %v1699_v38 }
 0x506   : > { %2095 = vpow2.f32 %v1700_v39 }
 0x50c   : > { %v2096_v40 = vpop.eup %2095 }
 0x50d   : > { %v1702_v41 = vadd.f32 1.0, %v2096_v40 }
 0x50f   : > { %2097 = vrcp.f32 %v1702_v41 }
 0x515   : > { %v2098_v42 = vpop.eup %2097 }
 0x516   : > { %2012 = vmatmul.msk.f32.vlgmr.msra.gmra.mxu3 %vm1716_vm11, %v2098_v42 }
 0x599   : > { %v1740_v44 = vpop.f32.mrf.mxu3 }
 0x59a   : > { %v1741_v45 = vadd.f32 %v1740_v44, %v1715_v43 }
 0x59c   : > { %1743 = vst [vmem:[%s486_s21] sm:$0x1] %v1741_v45 }
 0x59d   : > { %2126 = shalt.err (!%p2123_p3)
}
 0x59e   : > { %2023 = dma.vmem_to_hbm [thread:$0]  (%p2281_p5), %s1756_s17, 16, %s1758_s24, %s1745_s23  }
 0x59f PF: > { %s3139_s18 = sld [smem:[#allocation7_spill]] }
 0x5a0   : > { %s3140_s30 = sld [smem:[#allocation5_spill]] }
 0x5a5   : > { %p2029_p4 = scmp.ge.s32.totalorder %s3139_s18, 2 }
 0x5a6   : > { %s1769_s0 = sand.u32 1, %s3140_s30  }
 0x5a7   : > { %p2026_p7 = pnand %p2029_p4, %p2285_p6  ;;  %s1770_s22 = scalar_lea.sflag [#allocation3], %s1769_s0 }
 0x5a9   : > { %p2027_p8 = pneg %p2026_p7 }
 0x5ab   : > { %2144 = dma.done.wait (%p2027_p8), %s1770_s22, 16  }
 0x5ac   : > { %2146 = vsyncadd (%p2027_p8), %s1770_s22, 4294967280  ;;  %s3142_s21 = sld [smem:[#allocation8_spill]]  ;;  %s3145_s18 = smov %s2153_s19 }
 0x5ad   : > { %s3143_s26 = sld [smem:[#allocation6_spill]] }
 0x5ae   : > { %s3144_s20 = sld [smem:[#allocation9_spill]] }
 0x5b2   : > { %p25_p9 = scmp.ge.s32.totalorder %s3142_s21, 4  }
 0x5b3   : > { %s3146_s19 = smov %s3143_s26 }
 0x5b4   :  { %27 = sbr.rel (!%p25_p9) target bundleno = 5 (0x5), region = 130 }
 0x5b9   :  { %1775 = vsyncpa [#allocation3], 1 }
 0x5ba   :  { %1777 = vsyncpa [#allocation3 + $0x1], 1 }

</bundles_post_ra>
